<compile_context>
chip_gen: v5e
topology: v5e:2x2
jax: 0.10.0
libtpu: 0.0.40
codegen_flags: <defaults>
</compile_context>

<pallas_src>
import functools

import jax
import jax.numpy as jnp
from jax.experimental import pallas as pl
from jax.experimental.pallas import tpu as pltpu

KH = KW = 3          # kernel size
PAD = 1              # padding
BN_EPS = 1e-5
LEAKY_SLOPE = 0.2
LANE = 128

# Centre tap first so the residual (x itself) is the first Cin columns of the
# im2col patch matrix -> no separate residual input, no in-kernel relayout.
TAPS = ((1, 1), (0, 0), (0, 1), (0, 2), (1, 0), (1, 2), (2, 0), (2, 1), (2, 2))

# Production knob: on v6e/v7x with Cin/Cout >= 64 set this to jnp.bfloat16 (full-rate
# MXU, half the patch vreg footprint).  Kept f32 here so the toy-shape check against
# the f32 reference passes at 1e-4.  (Do NOT swap in int8 weight paths on v7x.)
MATMUL_DTYPE = jnp.float32


def _round_up(x, m):
    return (x + m - 1) // m * m


def _pick_row_tile(m):
    # Largest row tile (multiple of 8, capped at 512 rows) that divides M.
    # 512 rows keeps the pipeline near the HBM roofline while the double-buffered
    # tiles stay far under v7x's smaller scoped VMEM even at C = 128.
    for tm in (512, 256, 128, 64, 32, 16, 8):
        if m % tm == 0:
            return tm
    return m  # block == full dim is always legal


def cblock_kernel(patches_ref, w_ref, gamma_ref, beta_ref, out_ref,
                  scale_ref, shift_ref, *, cout_pad, m_total):
    """Two-phase kernel over grid (phase, row-tile).

    patches_ref : (TM, K_pad)    im2col rows (centre tap = first Cin columns)
    w_ref       : (K_pad, C_pad) folded conv weight
    gamma_ref   : (1, C_pad)     BN scale (zero padded)
    beta_ref    : (1, C_pad)     BN shift (zero padded)
    out_ref     : (TM, C_pad)    output tile (lane dense)
    scale_ref   : (1, C_pad)     scratch: channel sum    -> final BN scale
    shift_ref   : (1, C_pad)     scratch: channel sumsq  -> final BN shift
    """
    phase = pl.program_id(0)
    m = pl.program_id(1)
    last_m = pl.num_programs(1) - 1

    pat = patches_ref[...]
    # Single MXU matmul, K = 9*Cin (padded to a lane multiple), f32 accumulation.
    conv = jnp.dot(pat.astype(MATMUL_DTYPE), w_ref[...].astype(MATMUL_DTYPE),
                   preferred_element_type=jnp.float32)

    @pl.when(phase == 0)
    def _stats():
        @pl.when(m == 0)
        def _init():
            scale_ref[...] = jnp.zeros_like(scale_ref)
            shift_ref[...] = jnp.zeros_like(shift_ref)

        # One-pass stats; per-channel reduction done on the (otherwise idle) MXU.
        ones = jnp.ones((1, conv.shape[0]), jnp.float32)
        scale_ref[...] += jnp.dot(ones, conv, preferred_element_type=jnp.float32)
        shift_ref[...] += jnp.dot(ones, conv * conv,
                                  preferred_element_type=jnp.float32)

        @pl.when(m == last_m)
        def _finalize():
            inv_m = 1.0 / float(m_total)
            mean = scale_ref[...] * inv_m
            var = shift_ref[...] * inv_m - mean * mean        # E[x^2] - mean^2 (biased)
            s = gamma_ref[...] * jax.lax.rsqrt(var + BN_EPS)
            shift_ref[...] = beta_ref[...] - mean * s
            scale_ref[...] = s

    @pl.when(phase == 1)
    def _normalize_and_write():
        y = conv * scale_ref[...] + shift_ref[...]            # fused BN affine
        y = jnp.where(y >= 0, y, LEAKY_SLOPE * y)             # LeakyReLU(0.2)
        # Residual: the centre tap lives in the first Cin lanes of each patch row;
        # lanes >= Cout are padding and get sliced off wrapper-side.
        out_ref[...] = (y + pat[:, :cout_pad]).astype(out_ref.dtype)


def cblock_forward(x_nchw, w_oihw, gamma, beta):
    """CBlock forward. x_nchw: (N, Cin, H, W); w_oihw: (Cout, Cin, 3, 3)."""
    N, Cin, H, W = x_nchw.shape
    Cout = w_oihw.shape[0]
    assert Cin == Cout, "CBlock residual add requires in_channel == out_channel"

    K = KH * KW * Cin
    K_pad = _round_up(K, LANE)
    C_pad = _round_up(Cout, LANE)          # C_pad <= K_pad since Cout == Cin
    M = N * H * W
    TM = _pick_row_tile(M)
    m_tiles = M // TM

    # --- wrapper-side layout plumbing (fused by XLA under jit) ---
    x = jnp.transpose(x_nchw, (0, 2, 3, 1)).astype(jnp.float32)        # NHWC
    xpad = jnp.pad(x, ((0, 0), (PAD, PAD), (PAD, PAD), (0, 0)))
    cols = [xpad[:, kh:kh + H, kw:kw + W, :] for kh, kw in TAPS]
    patches = jnp.concatenate(cols, axis=-1).reshape(M, K)             # im2col
    patches = jnp.pad(patches, ((0, 0), (0, K_pad - K)))               # lane pad

    w_taps = [jnp.transpose(w_oihw[:, :, kh, kw], (1, 0)) for kh, kw in TAPS]
    w2d = jnp.concatenate(w_taps, axis=0).astype(jnp.float32)          # (K, Cout)
    w2d = jnp.pad(w2d, ((0, K_pad - K), (0, C_pad - Cout)))

    gamma_p = jnp.pad(gamma.astype(jnp.float32), (0, C_pad - Cout)).reshape(1, C_pad)
    beta_p = jnp.pad(beta.astype(jnp.float32), (0, C_pad - Cout)).reshape(1, C_pad)

    kernel = functools.partial(cblock_kernel, cout_pad=C_pad, m_total=M)

    out2d = pl.pallas_call(
        kernel,
        out_shape=jax.ShapeDtypeStruct((M, C_pad), jnp.float32),
        grid_spec=pltpu.PrefetchScalarGridSpec(
            num_scalar_prefetch=0,
            grid=(2, m_tiles),                       # (phase, row tile)
            in_specs=[
                pl.BlockSpec((TM, K_pad), lambda p, m: (m, 0)),
                pl.BlockSpec((K_pad, C_pad), lambda p, m: (0, 0)),
                pl.BlockSpec((1, C_pad), lambda p, m: (0, 0)),
                pl.BlockSpec((1, C_pad), lambda p, m: (0, 0)),
            ],
            # During the stats phase the output block index is pinned to 0, so no
            # garbage tiles get written back; phase 1 writes each tile exactly once.
            out_specs=pl.BlockSpec((TM, C_pad), lambda p, m: (m * p, 0)),
            scratch_shapes=[pltpu.VMEM((1, C_pad), jnp.float32),
                            pltpu.VMEM((1, C_pad), jnp.float32)],
        ),
        compiler_params=pltpu.CompilerParams(
            # BN batch statistics couple every row tile -> sequential grid.
            # TODO(synk): for v7x megacore, split into per-core partial-stats +
            # cross-core reduce + normalize so the row axis can be "parallel".
            dimension_semantics=("arbitrary", "arbitrary"),
            vmem_limit_bytes=32 * 1024 * 1024,
        ),
    )(patches, w2d, gamma_p, beta_p)

    out = out2d[:, :Cout].reshape(N, H, W, Cout)
    return jnp.transpose(out, (0, 3, 1, 2))                            # back to NCHW


def cblock_reference(x_nchw, w_oihw, gamma, beta):
    """Pure-JAX reference (verification only)."""
    x = jnp.transpose(x_nchw, (0, 2, 3, 1)).astype(jnp.float32)
    w = jnp.transpose(w_oihw, (2, 3, 1, 0)).astype(jnp.float32)
    conv = jax.lax.conv_general_dilated(
        x, w, window_strides=(1, 1), padding=((PAD, PAD), (PAD, PAD)),
        dimension_numbers=("NHWC", "HWIO", "NHWC"))
    mean = jnp.mean(conv, axis=(0, 1, 2), keepdims=True)
    var = jnp.mean((conv - mean) ** 2, axis=(0, 1, 2), keepdims=True)
    y = (conv - mean) * jax.lax.rsqrt(var + BN_EPS) * gamma + beta
    y = jnp.where(y >= 0, y, LEAKY_SLOPE * y)
    out = x + y
    return jnp.transpose(out, (0, 3, 1, 2))


if __name__ == "__main__":
    # Small shapes consistent with CBlock (in_channel == out_channel for the residual).
    N, C, H, W = 2, 4, 16, 16

    key = jax.random.PRNGKey(0)
    k_x, k_w, k_g = jax.random.split(key, 3)

    x = jax.random.normal(k_x, (N, C, H, W), dtype=jnp.float32)
    # Deterministic "weights_init": conv ~ N(0, 0.05), BN weight ~ N(1, 0.02), BN bias = 0.
    w_conv = 0.05 * jax.random.normal(k_w, (C, C, KH, KW), dtype=jnp.float32)
    gamma = 1.0 + 0.02 * jax.random.normal(k_g, (C,), dtype=jnp.float32)
    beta = jnp.zeros((C,), dtype=jnp.float32)

    fwd = jax.jit(cblock_forward)
    out = jax.block_until_ready(fwd(x, w_conv, gamma, beta))

    ref = cblock_reference(x, w_conv, gamma, beta)
    assert out.shape == (N, C, H, W)
    assert jnp.allclose(out, ref, atol=1e-4, rtol=1e-4), "mismatch vs reference"

    print("KERNEL_OK")
</pallas_src>

<mosaic_0001>
module attributes {stable_mosaic.version = 11 : i64} {
  func.func @cblock_kernel(%arg0: i32, %arg1: i32, %arg2: memref<512x128xf32, #tpu.memory_space<vmem>>, %arg3: memref<128x128xf32, #tpu.memory_space<vmem>>, %arg4: memref<1x128xf32, #tpu.memory_space<vmem>>, %arg5: memref<1x128xf32, #tpu.memory_space<vmem>>, %arg6: memref<512x128xf32, #tpu.memory_space<vmem>>, %arg7: memref<1x128xf32, #tpu.memory_space<vmem>>, %arg8: memref<1x128xf32, #tpu.memory_space<vmem>>) attributes {dimension_semantics = [#tpu.dimension_semantics<arbitrary>, #tpu.dimension_semantics<arbitrary>], iteration_bounds = array<i64: 2, 1>, scalar_prefetch = 0 : i64, scratch_operands = 2 : i64, tpu.core_type = #tpu.core_type<tc>, window_params = [{transform_indices = @transform_0, window_bounds = array<i64: 512, 128>}, {pipeline_mode = #tpu.pipeline_mode<synchronous>, transform_indices = @transform_1, window_bounds = array<i64: 128, 128>}, {pipeline_mode = #tpu.pipeline_mode<synchronous>, transform_indices = @transform_2, window_bounds = array<i64: 1, 128>}, {pipeline_mode = #tpu.pipeline_mode<synchronous>, transform_indices = @transform_3, window_bounds = array<i64: 1, 128>}, {transform_indices = @transform_4, window_bounds = array<i64: 512, 128>}]} {
    %c0 = arith.constant 0 : index
    %c0_0 = arith.constant 0 : index
    %0 = vector.load %arg2[%c0, %c0_0] : memref<512x128xf32, #tpu.memory_space<vmem>>, vector<512x128xf32>
    %c0_1 = arith.constant 0 : index
    %c0_2 = arith.constant 0 : index
    %1 = vector.load %arg3[%c0_1, %c0_2] : memref<128x128xf32, #tpu.memory_space<vmem>>, vector<128x128xf32>
    %cst = arith.constant dense<0.000000e+00> : vector<512x128xf32>
    %2 = tpu.matmul %0, %1, %cst {dimension_numbers = #tpu.dot_dimension_numbers<[1], [0], [0], [1], [0, 0, 1, 1], [], []>} : vector<512x128xf32>, vector<128x128xf32>, vector<512x128xf32> -> vector<512x128xf32>
    %c0_i32 = arith.constant 0 : i32
    %3 = arith.cmpi eq, %arg0, %c0_i32 : i32
    %4 = arith.extui %3 : i1 to i32
    %c0_i32_3 = arith.constant 0 : i32
    %5 = arith.cmpi ne, %4, %c0_i32_3 : i32
    scf.if %5 {
      %c0_i32_5 = arith.constant 0 : i32
      %9 = arith.cmpi eq, %arg1, %c0_i32_5 : i32
      %10 = arith.extui %9 : i1 to i32
      %c0_i32_6 = arith.constant 0 : i32
      %11 = arith.cmpi ne, %10, %c0_i32_6 : i32
      scf.if %11 {
        %cst_20 = arith.constant 0.000000e+00 : f32
        %25 = vector.broadcast %cst_20 : f32 to vector<1x128xf32>
        %c0_21 = arith.constant 0 : index
        %c0_22 = arith.constant 0 : index
        %26 = vector.load %arg7[%c0_21, %c0_22] : memref<1x128xf32, #tpu.memory_space<vmem>>, vector<1x128xf32>
        tpu.vector_store %arg7[%c0_21, %c0_22], %25 {strides = array<i32>} : memref<1x128xf32, #tpu.memory_space<vmem>>, vector<1x128xf32>,
        %cst_23 = arith.constant 0.000000e+00 : f32
        %27 = vector.broadcast %cst_23 : f32 to vector<1x128xf32>
        %c0_24 = arith.constant 0 : index
        %c0_25 = arith.constant 0 : index
        %28 = vector.load %arg8[%c0_24, %c0_25] : memref<1x128xf32, #tpu.memory_space<vmem>>, vector<1x128xf32>
        tpu.vector_store %arg8[%c0_24, %c0_25], %27 {strides = array<i32>} : memref<1x128xf32, #tpu.memory_space<vmem>>, vector<1x128xf32>,
      } else {
      }
      %cst_7 = arith.constant 1.000000e+00 : f32
      %12 = vector.broadcast %cst_7 : f32 to vector<1x512xf32>
      %c0_8 = arith.constant 0 : index
      %c0_9 = arith.constant 0 : index
      %13 = vector.load %arg7[%c0_8, %c0_9] : memref<1x128xf32, #tpu.memory_space<vmem>>, vector<1x128xf32>
      %cst_10 = arith.constant dense<0.000000e+00> : vector<1x128xf32>
      %14 = tpu.matmul %12, %2, %cst_10 {dimension_numbers = #tpu.dot_dimension_numbers<[1], [0], [0], [1], [0, 0, 1, 1], [], []>} : vector<1x512xf32>, vector<512x128xf32>, vector<1x128xf32> -> vector<1x128xf32>
      %15 = arith.addf %13, %14 : vector<1x128xf32>
      %c0_11 = arith.constant 0 : index
      %c0_12 = arith.constant 0 : index
      %16 = vector.load %arg7[%c0_11, %c0_12] : memref<1x128xf32, #tpu.memory_space<vmem>>, vector<1x128xf32>
      tpu.vector_store %arg7[%c0_11, %c0_12], %15 {strides = array<i32>} : memref<1x128xf32, #tpu.memory_space<vmem>>, vector<1x128xf32>,
      %c0_13 = arith.constant 0 : index
      %c0_14 = arith.constant 0 : index
      %17 = vector.load %arg8[%c0_13, %c0_14] : memref<1x128xf32, #tpu.memory_space<vmem>>, vector<1x128xf32>
      %18 = arith.mulf %2, %2 : vector<512x128xf32>
      %cst_15 = arith.constant dense<0.000000e+00> : vector<1x128xf32>
      %19 = tpu.matmul %12, %18, %cst_15 {dimension_numbers = #tpu.dot_dimension_numbers<[1], [0], [0], [1], [0, 0, 1, 1], [], []>} : vector<1x512xf32>, vector<512x128xf32>, vector<1x128xf32> -> vector<1x128xf32>
      %20 = arith.addf %17, %19 : vector<1x128xf32>
      %c0_16 = arith.constant 0 : index
      %c0_17 = arith.constant 0 : index
      %21 = vector.load %arg8[%c0_16, %c0_17] : memref<1x128xf32, #tpu.memory_space<vmem>>, vector<1x128xf32>
      tpu.vector_store %arg8[%c0_16, %c0_17], %20 {strides = array<i32>} : memref<1x128xf32, #tpu.memory_space<vmem>>, vector<1x128xf32>,
      %c0_i32_18 = arith.constant 0 : i32
      %22 = arith.cmpi eq, %arg1, %c0_i32_18 : i32
      %23 = arith.extui %22 : i1 to i32
      %c0_i32_19 = arith.constant 0 : i32
      %24 = arith.cmpi ne, %23, %c0_i32_19 : i32
      scf.if %24 {
        %c0_20 = arith.constant 0 : index
        %c0_21 = arith.constant 0 : index
        %25 = vector.load %arg7[%c0_20, %c0_21] : memref<1x128xf32, #tpu.memory_space<vmem>>, vector<1x128xf32>
        %cst_22 = arith.constant 0.001953125 : f32
        %26 = vector.broadcast %cst_22 : f32 to vector<1x128xf32>
        %27 = arith.mulf %25, %26 : vector<1x128xf32>
        %c0_23 = arith.constant 0 : index
        %c0_24 = arith.constant 0 : index
        %28 = vector.load %arg8[%c0_23, %c0_24] : memref<1x128xf32, #tpu.memory_space<vmem>>, vector<1x128xf32>
        %cst_25 = arith.constant 0.001953125 : f32
        %29 = vector.broadcast %cst_25 : f32 to vector<1x128xf32>
        %30 = arith.mulf %28, %29 : vector<1x128xf32>
        %31 = arith.mulf %27, %27 : vector<1x128xf32>
        %32 = arith.subf %30, %31 : vector<1x128xf32>
        %c0_26 = arith.constant 0 : index
        %c0_27 = arith.constant 0 : index
        %33 = vector.load %arg4[%c0_26, %c0_27] : memref<1x128xf32, #tpu.memory_space<vmem>>, vector<1x128xf32>
        %cst_28 = arith.constant 9.99999974E-6 : f32
        %34 = vector.broadcast %cst_28 : f32 to vector<1x128xf32>
        %35 = arith.addf %32, %34 : vector<1x128xf32>
        %36 = math.rsqrt %35 : vector<1x128xf32>
        %37 = arith.mulf %33, %36 : vector<1x128xf32>
        %c0_29 = arith.constant 0 : index
        %c0_30 = arith.constant 0 : index
        %38 = vector.load %arg5[%c0_29, %c0_30] : memref<1x128xf32, #tpu.memory_space<vmem>>, vector<1x128xf32>
        %39 = arith.mulf %27, %37 : vector<1x128xf32>
        %40 = arith.subf %38, %39 : vector<1x128xf32>
        %c0_31 = arith.constant 0 : index
        %c0_32 = arith.constant 0 : index
        %41 = vector.load %arg8[%c0_31, %c0_32] : memref<1x128xf32, #tpu.memory_space<vmem>>, vector<1x128xf32>
        tpu.vector_store %arg8[%c0_31, %c0_32], %40 {strides = array<i32>} : memref<1x128xf32, #tpu.memory_space<vmem>>, vector<1x128xf32>,
        %c0_33 = arith.constant 0 : index
        %c0_34 = arith.constant 0 : index
        %42 = vector.load %arg7[%c0_33, %c0_34] : memref<1x128xf32, #tpu.memory_space<vmem>>, vector<1x128xf32>
        tpu.vector_store %arg7[%c0_33, %c0_34], %37 {strides = array<i32>} : memref<1x128xf32, #tpu.memory_space<vmem>>, vector<1x128xf32>,
      } else {
      }
    } else {
    }
    %c1_i32 = arith.constant 1 : i32
    %6 = arith.cmpi eq, %arg0, %c1_i32 : i32
    %7 = arith.extui %6 : i1 to i32
    %c0_i32_4 = arith.constant 0 : i32
    %8 = arith.cmpi ne, %7, %c0_i32_4 : i32
    scf.if %8 {
      %c0_5 = arith.constant 0 : index
      %c0_6 = arith.constant 0 : index
      %9 = vector.load %arg7[%c0_5, %c0_6] : memref<1x128xf32, #tpu.memory_space<vmem>>, vector<1x128xf32>
      %10 = vector.broadcast %9 : vector<1x128xf32> to vector<512x128xf32>
      %11 = arith.mulf %2, %10 : vector<512x128xf32>
      %c0_7 = arith.constant 0 : index
      %c0_8 = arith.constant 0 : index
      %12 = vector.load %arg8[%c0_7, %c0_8] : memref<1x128xf32, #tpu.memory_space<vmem>>, vector<1x128xf32>
      %13 = vector.broadcast %12 : vector<1x128xf32> to vector<512x128xf32>
      %14 = arith.addf %11, %13 : vector<512x128xf32>
      %cst_9 = arith.constant 0.000000e+00 : f32
      %15 = vector.broadcast %cst_9 : f32 to vector<512x128xf32>
      %16 = arith.cmpf oge, %14, %15 : vector<512x128xf32>
      %cst_10 = arith.constant 2.000000e-01 : f32
      %17 = vector.broadcast %cst_10 : f32 to vector<512x128xf32>
      %18 = arith.mulf %17, %14 : vector<512x128xf32>
      %19 = arith.select %16, %14, %18 : vector<512x128xi1>, vector<512x128xf32>
      %20 = arith.addf %19, %0 : vector<512x128xf32>
      %c0_11 = arith.constant 0 : index
      %c0_12 = arith.constant 0 : index
      %21 = vector.load %arg6[%c0_11, %c0_12] : memref<512x128xf32, #tpu.memory_space<vmem>>, vector<512x128xf32>
      tpu.vector_store %arg6[%c0_11, %c0_12], %20 {strides = array<i32>} : memref<512x128xf32, #tpu.memory_space<vmem>>, vector<512x128xf32>,
    } else {
    }
    return
  }
  func.func @transform_0(%arg0: i32, %arg1: i32) -> (i32, i32) {
    %c0_i32 = arith.constant 0 : i32
    %c0_i32_0 = arith.constant 0 : i32
    return %arg1, %c0_i32 : i32, i32
  }
  func.func @transform_1(%arg0: i32, %arg1: i32) -> (i32, i32) {
    %c0_i32 = arith.constant 0 : i32
    %c0_i32_0 = arith.constant 0 : i32
    %c0_i32_1 = arith.constant 0 : i32
    return %c0_i32, %c0_i32_0 : i32, i32
  }
  func.func @transform_2(%arg0: i32, %arg1: i32) -> (i32, i32) {
    %c0_i32 = arith.constant 0 : i32
    %c0_i32_0 = arith.constant 0 : i32
    %c0_i32_1 = arith.constant 0 : i32
    return %c0_i32, %c0_i32_0 : i32, i32
  }
  func.func @transform_3(%arg0: i32, %arg1: i32) -> (i32, i32) {
    %c0_i32 = arith.constant 0 : i32
    %c0_i32_0 = arith.constant 0 : i32
    %c0_i32_1 = arith.constant 0 : i32
    return %c0_i32, %c0_i32_0 : i32, i32
  }
  func.func @transform_4(%arg0: i32, %arg1: i32) -> (i32, i32) {
    %0 = arith.muli %arg1, %arg0 : i32
    %c0_i32 = arith.constant 0 : i32
    %c0_i32_0 = arith.constant 0 : i32
    return %0, %c0_i32 : i32, i32
  }
}

</mosaic_0001>

<bundles_post_ra>
// kernel: cblock_forward.1
= control target key start
LH: loop header
LB: loop body
LE: loop exit
PB: predicated region body
PF: predicated region fallthrough
CT: control target
= control target key end

     0   :  { %s1445_s15 = smov 0   ;;  %s1447_s16 = smov 0   ;;  %s2686_s0 = inlined_call_operand.vmem [shape: f32[512,128], index: 0, kind: input, shape index: {}]   ;;  %s2687_s1 = inlined_call_operand.vmem [shape: f32[128,128], index: 1, kind: input, shape index: {}]   ;;  %s2688_s2 = inlined_call_operand.vmem [shape: f32[1,128], index: 2, kind: input, shape index: {}]   ;;  %s2689_s3 = inlined_call_operand.vmem [shape: f32[1,128], index: 3, kind: input, shape index: {}]   ;;  %s2690_s4 = inlined_call_operand.vmem [shape: f32[512,128], index: 4, kind: output, shape index: {}]  }
   0x1   :  { %s1449_s17 = smov 0  }
   0x2 LB: > { %s26_s18 = sadd.s32 1, %s1412_s16  ;;  %p1309_p0 = scmp.ge.s32.totalorder %s1416_s17, 1  ;;  %s1416_s17 = sphi %s1449_s17, %s14_s17   ;;  %s1412_s16 = sphi %s1447_s16, %s2952_s16   ;;  %s1408_s15 = sphi %s1445_s15, %s2951_s15  }
   0x3   : > { %p28_p1 = scmp.ge.s32.totalorder %s26_s18, 2  ;;  %p177_p2 = scmp.lt.s32.totalorder %s1416_s17, 3 }
   0x5   : > { %s2954_s18 = smov (%p28_p1, %s26_s18), 0  ;;  %p178_p3 = pnand %p1309_p0, %p177_p2 }
   0x7   : > { %181 = sbr.rel (%p178_p3) target bundleno = 649 (0x289), region = 36 }
   0xc   : > { %v297_v0 = vld [vmem:[%s2687_s1 + $0x78] sm:$0xff]  ;;  %v296_v1 = vld [vmem:[%s2687_s1 + $0x70] sm:$0xff]  ;;  %v295_v2 = vld [vmem:[%s2687_s1 + $0x68] sm:$0xff]  ;;  %p1310_p4 = scmp.ne.s32.totalorder %s1408_s15, 0 }
   0xd   : > { %1317 = vmatpush.msra.mxu2 %v297_v0  ;;  %1318 = vmatpush.msra.mxu3 %v297_v0  ;;  %v294_v3 = vld [vmem:[%s2687_s1 + $0x60] sm:$0xff]  ;;  %v293_v4 = vld [vmem:[%s2687_s1 + $0x58] sm:$0xff]  ;;  %v292_v5 = vld [vmem:[%s2687_s1 + $0x50] sm:$0xff] }
   0xe   : > { %298 = vmatpush.msra.mxu0 %v297_v0  ;;  %1316 = vmatpush.msra.mxu1 %v297_v0  ;;  %v291_v6 = vld [vmem:[%s2687_s1 + $0x48] sm:$0xff]  ;;  %v290_v7 = vld [vmem:[%s2687_s1 + $0x40] sm:$0xff]  ;;  %v289_v8 = vld [vmem:[%s2687_s1 + $0x38] sm:$0xff] }
   0xf   : > { %1320 = vmatpush.msra.mxu2 %v296_v1  ;;  %1321 = vmatpush.msra.mxu3 %v296_v1  ;;  %v288_v9 = vld [vmem:[%s2687_s1 + $0x30] sm:$0xff]  ;;  %v287_v10 = vld [vmem:[%s2687_s1 + $0x28] sm:$0xff]  ;;  %v286_v11 = vld [vmem:[%s2687_s1 + $0x20] sm:$0xff] }
  0x10   : > { %299 = vmatpush.msra.mxu0 %v296_v1  ;;  %1319 = vmatpush.msra.mxu1 %v296_v1  ;;  %v285_v12 = vld [vmem:[%s2687_s1 + $0x18] sm:$0xff]  ;;  %v284_v13 = vld [vmem:[%s2687_s1 + $0x10] sm:$0xff]  ;;  %v283_v14 = vld [vmem:[%s2687_s1 + $0x8] sm:$0xff] }
  0x11   : > { %1323 = vmatpush.msra.mxu2 %v295_v2  ;;  %1324 = vmatpush.msra.mxu3 %v295_v2  ;;  %v282_v15 = vld [vmem:[%s2687_s1] sm:$0xff]  ;;  %v1540_v20 = vld [vmem:[%s2686_s0 + $0x108] sm:$0xff]  ;;  %v1564_v24 = vld [vmem:[%s2686_s0 + $0x110] sm:$0xff] }
  0x12   : > { %300 = vmatpush.msra.mxu0 %v295_v2  ;;  %1322 = vmatpush.msra.mxu1 %v295_v2  ;;  %v1516_v16 = vld [vmem:[%s2686_s0 + $0x100] sm:$0xff]  ;;  %2780 = vst [vmem:[#allocation8_spill] sm:$0xff] %v1540_v20  ;;  %v1545_v21 = vld [vmem:[%s2686_s0 + $0x188] sm:$0xff]  ;;  %v1569_v25 = vld [vmem:[%s2686_s0 + $0x190] sm:$0xff] }
  0x13   : > { %1326 = vmatpush.msra.mxu2 %v294_v3  ;;  %1327 = vmatpush.msra.mxu3 %v294_v3  ;;  %2776 = vst [vmem:[#allocation4_spill] sm:$0xff] %v1516_v16  ;;  %v1521_v17 = vld [vmem:[%s2686_s0 + $0x180] sm:$0xff]  ;;  %v1550_v22 = vld [vmem:[%s2686_s0 + $0x8] sm:$0xff]  ;;  %v1574_v26 = vld [vmem:[%s2686_s0 + $0x10] sm:$0xff] }
  0x14   : > { %301 = vmatpush.msra.mxu0 %v294_v3  ;;  %1325 = vmatpush.msra.mxu1 %v294_v3  ;;  %2777 = vst [vmem:[#allocation5_spill] sm:$0xff] %v1521_v17  ;;  %v1526_v18 = vld [vmem:[%s2686_s0] sm:$0xff]  ;;  %v1555_v23 = vld [vmem:[%s2686_s0 + $0x88] sm:$0xff]  ;;  %v1579_v27 = vld [vmem:[%s2686_s0 + $0x90] sm:$0xff] }
  0x15   : > { %1329 = vmatpush.msra.mxu2 %v293_v4  ;;  %1330 = vmatpush.msra.mxu3 %v293_v4  ;;  %2778 = vst [vmem:[#allocation6_spill] sm:$0xff] %v1526_v18  ;;  %v1531_v19 = vld [vmem:[%s2686_s0 + $0x80] sm:$0xff]  ;;  %v1588_v28 = vld [vmem:[%s2686_s0 + $0x118] sm:$0xff]  ;;  %v1636_v36 = vld [vmem:[%s2686_s0 + $0x128] sm:$0xff] }
  0x16   : > { %302 = vmatpush.msra.mxu0 %v293_v4  ;;  %1328 = vmatpush.msra.mxu1 %v293_v4  ;;  %2779 = vst [vmem:[#allocation7_spill] sm:$0xff] %v1531_v19  ;;  %v1593_v29 = vld [vmem:[%s2686_s0 + $0x198] sm:$0xff]  ;;  %v1612_v32 = vld [vmem:[%s2686_s0 + $0x120] sm:$0xff]  ;;  %v1641_v37 = vld [vmem:[%s2686_s0 + $0x1a8] sm:$0xff] }
  0x17   : > { %1332 = vmatpush.msra.mxu2 %v292_v5  ;;  %1333 = vmatpush.msra.mxu3 %v292_v5  ;;  %2781 = vst [vmem:[#allocation9_spill] sm:$0xff] %v1545_v21  ;;  %v1598_v30 = vld [vmem:[%s2686_s0 + $0x18] sm:$0xff]  ;;  %v1617_v33 = vld [vmem:[%s2686_s0 + $0x1a0] sm:$0xff]  ;;  %v1646_v38 = vld [vmem:[%s2686_s0 + $0x28] sm:$0xff] }
  0x18   : > { %303 = vmatpush.msra.mxu0 %v292_v5  ;;  %1331 = vmatpush.msra.mxu1 %v292_v5  ;;  %2782 = vst [vmem:[#allocation10_spill] sm:$0xff] %v1550_v22  ;;  %v1603_v31 = vld [vmem:[%s2686_s0 + $0x98] sm:$0xff]  ;;  %v1622_v34 = vld [vmem:[%s2686_s0 + $0x20] sm:$0xff]  ;;  %v1651_v39 = vld [vmem:[%s2686_s0 + $0xa8] sm:$0xff] }
  0x19   : > { %1335 = vmatpush.msra.mxu2 %v291_v6  ;;  %1336 = vmatpush.msra.mxu3 %v291_v6  ;;  %2783 = vst [vmem:[#allocation11_spill] sm:$0xff] %v1555_v23  ;;  %v1627_v35 = vld [vmem:[%s2686_s0 + $0xa0] sm:$0xff]  ;;  %v1660_v40 = vld [vmem:[%s2686_s0 + $0x130] sm:$0xff]  ;;  %v1684_v44 = vld [vmem:[%s2686_s0 + $0x138] sm:$0xff] }
  0x1a   : > { %304 = vmatpush.msra.mxu0 %v291_v6  ;;  %1334 = vmatpush.msra.mxu1 %v291_v6  ;;  %2784 = vst [vmem:[#allocation12_spill] sm:$0xff] %v1564_v24  ;;  %v1665_v41 = vld [vmem:[%s2686_s0 + $0x1b0] sm:$0xff]  ;;  %v1689_v45 = vld [vmem:[%s2686_s0 + $0x1b8] sm:$0xff]  ;;  %v1708_v48 = vld [vmem:[%s2686_s0 + $0x140] sm:$0xff] }
  0x1b   : > { %1338 = vmatpush.msra.mxu2 %v290_v7  ;;  %1339 = vmatpush.msra.mxu3 %v290_v7  ;;  %2785 = vst [vmem:[#allocation13_spill] sm:$0xff] %v1569_v25  ;;  %v1670_v42 = vld [vmem:[%s2686_s0 + $0x30] sm:$0xff]  ;;  %v1694_v46 = vld [vmem:[%s2686_s0 + $0x38] sm:$0xff]  ;;  %v1713_v49 = vld [vmem:[%s2686_s0 + $0x1c0] sm:$0xff] }
  0x1c   : > { %305 = vmatpush.msra.mxu0 %v290_v7  ;;  %1337 = vmatpush.msra.mxu1 %v290_v7  ;;  %2786 = vst [vmem:[#allocation14_spill] sm:$0xff] %v1574_v26  ;;  %v1675_v43 = vld [vmem:[%s2686_s0 + $0xb0] sm:$0xff]  ;;  %v1699_v47 = vld [vmem:[%s2686_s0 + $0xb8] sm:$0xff]  ;;  %v1718_v50 = vld [vmem:[%s2686_s0 + $0x40] sm:$0xff] }
  0x1d   : > { %1341 = vmatpush.msra.mxu2 %v289_v8  ;;  %1342 = vmatpush.msra.mxu3 %v289_v8  ;;  %2787 = vst [vmem:[#allocation15_spill] sm:$0xff] %v1579_v27  ;;  %v1723_v51 = vld [vmem:[%s2686_s0 + $0xc0] sm:$0xff]  ;;  %v1732_v52 = vld [vmem:[%s2686_s0 + $0x148] sm:$0xff]  ;;  %v1756_v56 = vld [vmem:[%s2686_s0 + $0x150] sm:$0xff] }
  0x1e   : > { %306 = vmatpush.msra.mxu0 %v289_v8  ;;  %1340 = vmatpush.msra.mxu1 %v289_v8  ;;  %2788 = vst [vmem:[#allocation16_spill] sm:$0xff] %v1588_v28  ;;  %v1737_v53 = vld [vmem:[%s2686_s0 + $0x1c8] sm:$0xff]  ;;  %v1761_v57 = vld [vmem:[%s2686_s0 + $0x1d0] sm:$0xff]  ;;  %v1780_v60 = vld [vmem:[%s2686_s0 + $0x158] sm:$0xff] }
  0x1f   : > { %1344 = vmatpush.msra.mxu2 %v288_v9  ;;  %1345 = vmatpush.msra.mxu3 %v288_v9  ;;  %2789 = vst [vmem:[#allocation17_spill] sm:$0xff] %v1593_v29  ;;  %v1742_v54 = vld [vmem:[%s2686_s0 + $0x48] sm:$0xff]  ;;  %v1766_v58 = vld [vmem:[%s2686_s0 + $0x50] sm:$0xff]  ;;  %v1785_v61 = vld [vmem:[%s2686_s0 + $0x1d8] sm:$0xff] }
  0x20   : > { %307 = vmatpush.msra.mxu0 %v288_v9  ;;  %1343 = vmatpush.msra.mxu1 %v288_v9  ;;  %2790 = vst [vmem:[#allocation18_spill] sm:$0xff] %v1598_v30  ;;  %v1747_v55 = vld [vmem:[%s2686_s0 + $0xc8] sm:$0xff]  ;;  %v1771_v59 = vld [vmem:[%s2686_s0 + $0xd0] sm:$0xff]  ;;  %v1790_v62 = vld [vmem:[%s2686_s0 + $0x58] sm:$0xff] }
  0x21   : > { %1347 = vmatpush.msra.mxu2 %v287_v10  ;;  %1348 = vmatpush.msra.mxu3 %v287_v10  ;;  %2791 = vst [vmem:[#allocation19_spill] sm:$0xff] %v1603_v31  ;;  %v1795_v63 = vld [vmem:[%s2686_s0 + $0xd8] sm:$0xff]  ;;  %v1804_v0 = vld [vmem:[%s2686_s0 + $0x160] sm:$0xff]  ;;  %v1828_v4 = vld [vmem:[%s2686_s0 + $0x168] sm:$0xff] }
  0x22   : > { %308 = vmatpush.msra.mxu0 %v287_v10  ;;  %1346 = vmatpush.msra.mxu1 %v287_v10  ;;  %2792 = vst [vmem:[#allocation20_spill] sm:$0xff] %v1612_v32  ;;  %v1809_v1 = vld [vmem:[%s2686_s0 + $0x1e0] sm:$0xff]  ;;  %v1833_v5 = vld [vmem:[%s2686_s0 + $0x1e8] sm:$0xff]  ;;  %v1852_v8 = vld [vmem:[%s2686_s0 + $0x170] sm:$0xff] }
  0x23   : > { %1350 = vmatpush.msra.mxu2 %v286_v11  ;;  %1351 = vmatpush.msra.mxu3 %v286_v11  ;;  %2793 = vst [vmem:[#allocation21_spill] sm:$0xff] %v1617_v33  ;;  %v1814_v2 = vld [vmem:[%s2686_s0 + $0x60] sm:$0xff]  ;;  %v1838_v6 = vld [vmem:[%s2686_s0 + $0x68] sm:$0xff]  ;;  %v1857_v9 = vld [vmem:[%s2686_s0 + $0x1f0] sm:$0xff] }
  0x24   : > { %309 = vmatpush.msra.mxu0 %v286_v11  ;;  %1349 = vmatpush.msra.mxu1 %v286_v11  ;;  %2794 = vst [vmem:[#allocation22_spill] sm:$0xff] %v1622_v34  ;;  %v1819_v3 = vld [vmem:[%s2686_s0 + $0xe0] sm:$0xff]  ;;  %v1843_v7 = vld [vmem:[%s2686_s0 + $0xe8] sm:$0xff]  ;;  %v1862_v10 = vld [vmem:[%s2686_s0 + $0x70] sm:$0xff] }
  0x25   : > { %1353 = vmatpush.msra.mxu2 %v285_v12  ;;  %1354 = vmatpush.msra.mxu3 %v285_v12  ;;  %2795 = vst [vmem:[#allocation23_spill] sm:$0xff] %v1627_v35  ;;  %v1867_v11 = vld [vmem:[%s2686_s0 + $0xf0] sm:$0xff] }
  0x26   : > { %310 = vmatpush.msra.mxu0 %v285_v12  ;;  %1352 = vmatpush.msra.mxu1 %v285_v12  ;;  %2796 = vst [vmem:[#allocation24_spill] sm:$0xff] %v1636_v36  ;;  %v1876_v12 = vld [vmem:[%s2686_s0 + $0x178] sm:$0xff] }
  0x27   : > { %1356 = vmatpush.msra.mxu2 %v284_v13  ;;  %1357 = vmatpush.msra.mxu3 %v284_v13  ;;  %2797 = vst [vmem:[#allocation25_spill] sm:$0xff] %v1641_v37 }
  0x28   : > { %311 = vmatpush.msra.mxu0 %v284_v13  ;;  %1355 = vmatpush.msra.mxu1 %v284_v13  ;;  %2798 = vst [vmem:[#allocation26_spill] sm:$0xff] %v1646_v38  ;;  %v1881_v13 = vld [vmem:[%s2686_s0 + $0x1f8] sm:$0xff] }
  0x29   : > { %1359 = vmatpush.msra.mxu2 %v283_v14  ;;  %1360 = vmatpush.msra.mxu3 %v283_v14  ;;  %2799 = vst [vmem:[#allocation27_spill] sm:$0xff] %v1651_v39 }
  0x2a   : > { %312 = vmatpush.msra.mxu0 %v283_v14  ;;  %1358 = vmatpush.msra.mxu1 %v283_v14  ;;  %2800 = vst [vmem:[#allocation28_spill] sm:$0xff] %v1660_v40  ;;  %v1886_v14 = vld [vmem:[%s2686_s0 + $0x78] sm:$0xff] }
  0x2b   : > { %1362 = vmatpush.msra.mxu2 %v282_v15  ;;  %1363 = vmatpush.msra.mxu3 %v282_v15  ;;  %2801 = vst [vmem:[#allocation29_spill] sm:$0xff] %v1665_v41 }
  0x2c   : > { %410 = vmatmul.f32.vlgmr.msra.gmra.mxu2 %v1516_v16  ;;  %458 = vmatmul.f32.vlgmr.msra.gmra.mxu3 %v1521_v17  ;;  %2802 = vst [vmem:[#allocation30_spill] sm:$0xff] %v1670_v42 }
  0x2d   : > { %313 = vmatpush.msra.mxu0 %v282_v15  ;;  %1361 = vmatpush.msra.mxu1 %v282_v15  ;;  %2803 = vst [vmem:[#allocation31_spill] sm:$0xff] %v1675_v43  ;;  %v1891_v15 = vld [vmem:[%s2686_s0 + $0xf8] sm:$0xff] }
  0x2e   : > { %314 = vmatmul.f32.vlgmr.msra.gmra.mxu0 %v1526_v18  ;;  %362 = vmatmul.f32.vlgmr.msra.gmra.mxu1 %v1531_v19  ;;  %2804 = vst [vmem:[#allocation32_spill] sm:$0xff] %v1684_v44 }
  0x2f   : > { %2805 = vst [vmem:[#allocation33_spill] sm:$0xff] %v1689_v45 }
  0x30   : > { %2806 = vst [vmem:[#allocation34_spill] sm:$0xff] %v1694_v46 }
  0x31   : > { %2807 = vst [vmem:[#allocation35_spill] sm:$0xff] %v1699_v47 }
  0x32   : > { %2808 = vst [vmem:[#allocation36_spill] sm:$0xff] %v1708_v48 }
  0x33   : > { %2809 = vst [vmem:[#allocation37_spill] sm:$0xff] %v1713_v49 }
  0x34   : > { %413 = vmatmul.f32.gmra.mxu2 %v1540_v20  ;;  %461 = vmatmul.f32.gmra.mxu3 %v1545_v21  ;;  %2810 = vst [vmem:[#allocation38_spill] sm:$0xff] %v1718_v50 }
  0x35   : > { %2811 = vst [vmem:[#allocation39_spill] sm:$0xff] %v1723_v51 }
  0x36   : > { %317 = vmatmul.f32.gmra.mxu0 %v1550_v22  ;;  %365 = vmatmul.f32.gmra.mxu1 %v1555_v23  ;;  %2812 = vst [vmem:[#allocation40_spill] sm:$0xff] %v1732_v52 }
  0x37   : > { %2813 = vst [vmem:[#allocation41_spill] sm:$0xff] %v1737_v53 }
  0x38   : > { %2814 = vst [vmem:[#allocation42_spill] sm:$0xff] %v1742_v54 }
  0x39   : > { %2815 = vst [vmem:[#allocation43_spill] sm:$0xff] %v1747_v55 }
  0x3a   : > { %2816 = vst [vmem:[#allocation44_spill] sm:$0xff] %v1756_v56 }
  0x3b   : > { %2817 = vst [vmem:[#allocation45_spill] sm:$0xff] %v1761_v57 }
  0x3c   : > { %416 = vmatmul.f32.gmra.mxu2 %v1564_v24  ;;  %464 = vmatmul.f32.gmra.mxu3 %v1569_v25  ;;  %2818 = vst [vmem:[#allocation46_spill] sm:$0xff] %v1766_v58 }
  0x3d   : > { %2819 = vst [vmem:[#allocation47_spill] sm:$0xff] %v1771_v59 }
  0x3e   : > { %320 = vmatmul.f32.gmra.mxu0 %v1574_v26  ;;  %368 = vmatmul.f32.gmra.mxu1 %v1579_v27  ;;  %2820 = vst [vmem:[#allocation48_spill] sm:$0xff] %v1780_v60 }
  0x3f   : > { %2821 = vst [vmem:[#allocation49_spill] sm:$0xff] %v1785_v61 }
  0x40   : > { %2822 = vst [vmem:[#allocation50_spill] sm:$0xff] %v1790_v62 }
  0x41   : > { %2823 = vst [vmem:[#allocation51_spill] sm:$0xff] %v1795_v63 }
  0x42   : > { %2824 = vst [vmem:[#allocation52_spill] sm:$0xff] %v1804_v0 }
  0x43   : > { %2825 = vst [vmem:[#allocation53_spill] sm:$0xff] %v1809_v1 }
  0x44   : > { %419 = vmatmul.f32.gmra.mxu2 %v1588_v28  ;;  %467 = vmatmul.f32.gmra.mxu3 %v1593_v29  ;;  %2826 = vst [vmem:[#allocation54_spill] sm:$0xff] %v1814_v2 }
  0x45   : > { %2827 = vst [vmem:[#allocation55_spill] sm:$0xff] %v1819_v3 }
  0x46   : > { %323 = vmatmul.f32.gmra.mxu0 %v1598_v30  ;;  %371 = vmatmul.f32.gmra.mxu1 %v1603_v31  ;;  %2828 = vst [vmem:[#allocation56_spill] sm:$0xff] %v1828_v4 }
  0x47   : > { %2829 = vst [vmem:[#allocation57_spill] sm:$0xff] %v1833_v5 }
  0x48   : > { %2830 = vst [vmem:[#allocation58_spill] sm:$0xff] %v1838_v6 }
  0x49   : > { %2831 = vst [vmem:[#allocation59_spill] sm:$0xff] %v1843_v7 }
  0x4a   : > { %2832 = vst [vmem:[#allocation60_spill] sm:$0xff] %v1852_v8 }
  0x4b   : > { %2833 = vst [vmem:[#allocation61_spill] sm:$0xff] %v1857_v9 }
  0x4c   : > { %422 = vmatmul.f32.gmra.mxu2 %v1612_v32  ;;  %470 = vmatmul.f32.gmra.mxu3 %v1617_v33  ;;  %2834 = vst [vmem:[#allocation62_spill] sm:$0xff] %v1862_v10 }
  0x4d   : > { %2835 = vst [vmem:[#allocation63_spill] sm:$0xff] %v1867_v11 }
  0x4e   : > { %326 = vmatmul.f32.gmra.mxu0 %v1622_v34  ;;  %374 = vmatmul.f32.gmra.mxu1 %v1627_v35  ;;  %2836 = vst [vmem:[#allocation64_spill] sm:$0xff] %v1876_v12 }
  0x4f   : > { %2837 = vst [vmem:[#allocation65_spill] sm:$0xff] %v1881_v13 }
  0x50   : > { %2838 = vst [vmem:[#allocation66_spill] sm:$0xff] %v1886_v14 }
  0x51   : > { %2839 = vst [vmem:[#allocation67_spill] sm:$0xff] %v1891_v15 }
  0x54   : > { %425 = vmatmul.f32.gmra.mxu2 %v1636_v36  ;;  %473 = vmatmul.f32.gmra.mxu3 %v1641_v37 }
  0x56   : > { %329 = vmatmul.f32.gmra.mxu0 %v1646_v38  ;;  %377 = vmatmul.f32.gmra.mxu1 %v1651_v39 }
  0x5c   : > { %428 = vmatmul.f32.gmra.mxu2 %v1660_v40  ;;  %476 = vmatmul.f32.gmra.mxu3 %v1665_v41 }
  0x5e   : > { %332 = vmatmul.f32.gmra.mxu0 %v1670_v42  ;;  %380 = vmatmul.f32.gmra.mxu1 %v1675_v43 }
  0x64   : > { %431 = vmatmul.f32.gmra.mxu2 %v1684_v44  ;;  %479 = vmatmul.f32.gmra.mxu3 %v1689_v45 }
  0x66   : > { %335 = vmatmul.f32.gmra.mxu0 %v1694_v46  ;;  %383 = vmatmul.f32.gmra.mxu1 %v1699_v47 }
  0x6c   : > { %434 = vmatmul.f32.gmra.mxu2 %v1708_v48  ;;  %482 = vmatmul.f32.gmra.mxu3 %v1713_v49 }
  0x6e   : > { %338 = vmatmul.f32.gmra.mxu0 %v1718_v50  ;;  %386 = vmatmul.f32.gmra.mxu1 %v1723_v51 }
  0x74   : > { %437 = vmatmul.f32.gmra.mxu2 %v1732_v52  ;;  %485 = vmatmul.f32.gmra.mxu3 %v1737_v53 }
  0x76   : > { %341 = vmatmul.f32.gmra.mxu0 %v1742_v54  ;;  %389 = vmatmul.f32.gmra.mxu1 %v1747_v55 }
  0x7c   : > { %440 = vmatmul.f32.gmra.mxu2 %v1756_v56  ;;  %488 = vmatmul.f32.gmra.mxu3 %v1761_v57 }
  0x7e   : > { %344 = vmatmul.f32.gmra.mxu0 %v1766_v58  ;;  %392 = vmatmul.f32.gmra.mxu1 %v1771_v59 }
  0x84   : > { %443 = vmatmul.f32.gmra.mxu2 %v1780_v60  ;;  %491 = vmatmul.f32.gmra.mxu3 %v1785_v61 }
  0x86   : > { %347 = vmatmul.f32.gmra.mxu0 %v1790_v62  ;;  %395 = vmatmul.f32.gmra.mxu1 %v1795_v63 }
  0x8c   : > { %446 = vmatmul.f32.gmra.mxu2 %v1804_v0  ;;  %494 = vmatmul.f32.gmra.mxu3 %v1809_v1 }
  0x8e   : > { %350 = vmatmul.f32.gmra.mxu0 %v1814_v2  ;;  %398 = vmatmul.f32.gmra.mxu1 %v1819_v3 }
  0x94   : > { %449 = vmatmul.f32.gmra.mxu2 %v1828_v4  ;;  %497 = vmatmul.f32.gmra.mxu3 %v1833_v5 }
  0x96   : > { %353 = vmatmul.f32.gmra.mxu0 %v1838_v6  ;;  %401 = vmatmul.f32.gmra.mxu1 %v1843_v7 }
  0x9c   : > { %452 = vmatmul.f32.gmra.mxu2 %v1852_v8  ;;  %500 = vmatmul.f32.gmra.mxu3 %v1857_v9 }
  0x9e   : > { %356 = vmatmul.f32.gmra.mxu0 %v1862_v10  ;;  %404 = vmatmul.f32.gmra.mxu1 %v1867_v11 }
  0xa4   : > { %455 = vmatmul.f32.gmra.mxu2 %v1876_v12  ;;  %503 = vmatmul.f32.gmra.mxu3 %v1881_v13 }
  0xa6   : > { %359 = vmatmul.f32.gmra.mxu0 %v1886_v14  ;;  %407 = vmatmul.f32.gmra.mxu1 %v1891_v15 }
  0xab   : > { %v1897_v9 = vpop.f32.mrf.mxu0  ;;  %v1899_v5 = vpop.f32.mrf.mxu1 }
  0xaf   : > { %v1901_v1 = vpop.f32.mrf.mxu2  ;;  %v1903_v61 = vpop.f32.mrf.mxu3 }
  0xb3   : > { %v1905_v57 = vpop.f32.mrf.mxu0  ;;  %v1907_v53 = vpop.f32.mrf.mxu1 }
  0xb4   : > { %2840 = vst [vmem:[#allocation68_spill] sm:$0xff] %v1907_v53 }
  0xb7   : > { %v1909_v49 = vpop.f32.mrf.mxu2  ;;  %v1911_v45 = vpop.f32.mrf.mxu3 }
  0xbb   : > { %v1913_v13 = vpop.f32.mrf.mxu0  ;;  %v1915_v41 = vpop.f32.mrf.mxu1 }
  0xbc   : > { %2841 = vst [vmem:[#allocation69_spill] sm:$0xff] %v1915_v41 }
  0xbf   : > { %v1917_v37 = vpop.f32.mrf.mxu2  ;;  %v1919_v33 = vpop.f32.mrf.mxu3 }
  0xc0   : > { %2842 = vst [vmem:[#allocation70_spill] sm:$0xff] %v1919_v33 }
  0xc3   : > { %v1921_v29 = vpop.f32.mrf.mxu0  ;;  %v1923_v25 = vpop.f32.mrf.mxu1 }
  0xc7   : > { %v1925_v21 = vpop.f32.mrf.mxu2  ;;  %v1927_v17 = vpop.f32.mrf.mxu3 }
  0xcb   : > { %v1929_v12 = vpop.f32.mrf.mxu0  ;;  %v1931_v8 = vpop.f32.mrf.mxu1 }
  0xcc   : > { %2843 = vst [vmem:[#allocation71_spill] sm:$0xff] %v1929_v12 }
  0xcd   : > { %2844 = vst [vmem:[#allocation72_spill] sm:$0xff] %v1931_v8 }
  0xcf   : > { %v1933_v4 = vpop.f32.mrf.mxu2  ;;  %v1935_v0 = vpop.f32.mrf.mxu3 }
  0xd3   : > { %v1937_v60 = vpop.f32.mrf.mxu0  ;;  %v1939_v56 = vpop.f32.mrf.mxu1 }
  0xd7   : > { %v1941_v52 = vpop.f32.mrf.mxu2  ;;  %v1943_v48 = vpop.f32.mrf.mxu3 }
  0xd8   : > { %2845 = vst [vmem:[#allocation73_spill] sm:$0xff] %v1943_v48 }
  0xdb   : > { %v1945_v44 = vpop.f32.mrf.mxu0  ;;  %v1947_v40 = vpop.f32.mrf.mxu1 }
  0xdf   : > { %v1949_v36 = vpop.f32.mrf.mxu2  ;;  %v1951_v32 = vpop.f32.mrf.mxu3 }
  0xe0   : > { %2846 = vst [vmem:[#allocation74_spill] sm:$0xff] %v1951_v32 }
  0xe3   : > { %v1953_v28 = vpop.f32.mrf.mxu0  ;;  %v1955_v24 = vpop.f32.mrf.mxu1 }
  0xe7   : > { %v1957_v20 = vpop.f32.mrf.mxu2  ;;  %v1959_v16 = vpop.f32.mrf.mxu3 }
  0xe8   : > { %2847 = vst [vmem:[#allocation75_spill] sm:$0xff] %v1959_v16 }
  0xeb   : > { %v1961_v15 = vpop.f32.mrf.mxu0  ;;  %v1963_v11 = vpop.f32.mrf.mxu1 }
  0xef   : > { %v1965_v7 = vpop.f32.mrf.mxu2  ;;  %v1967_v3 = vpop.f32.mrf.mxu3 }
  0xf0   : > { %2848 = vst [vmem:[#allocation76_spill] sm:$0xff] %v1967_v3 }
  0xf3   : > { %v1969_v63 = vpop.f32.mrf.mxu0  ;;  %v1971_v59 = vpop.f32.mrf.mxu1 }
  0xf7   : > { %v1973_v55 = vpop.f32.mrf.mxu2  ;;  %v1975_v51 = vpop.f32.mrf.mxu3 }
  0xf8   : > { %2849 = vst [vmem:[#allocation77_spill] sm:$0xff] %v1975_v51 }
  0xfb   : > { %v1977_v47 = vpop.f32.mrf.mxu0  ;;  %v1979_v43 = vpop.f32.mrf.mxu1 }
  0xff   : > { %v1981_v39 = vpop.f32.mrf.mxu2  ;;  %v1983_v35 = vpop.f32.mrf.mxu3 }
 0x100   : > { %2850 = vst [vmem:[#allocation78_spill] sm:$0xff] %v1983_v35 }
 0x103   : > { %v1985_v31 = vpop.f32.mrf.mxu0  ;;  %v1987_v27 = vpop.f32.mrf.mxu1 }
 0x107   : > { %v1989_v23 = vpop.f32.mrf.mxu2  ;;  %v1991_v19 = vpop.f32.mrf.mxu3 }
 0x108   : > { %2851 = vst [vmem:[#allocation79_spill] sm:$0xff] %v1991_v19 }
 0x10b   : > { %v1993_v14 = vpop.f32.mrf.mxu0  ;;  %v1995_v10 = vpop.f32.mrf.mxu1 }
 0x10f   : > { %v1997_v6 = vpop.f32.mrf.mxu2  ;;  %v1999_v2 = vpop.f32.mrf.mxu3 }
 0x110   : > { %2852 = vst [vmem:[#allocation80_spill] sm:$0xff] %v1999_v2 }
 0x113   : > { %v2001_v62 = vpop.f32.mrf.mxu0  ;;  %v2003_v58 = vpop.f32.mrf.mxu1 }
 0x117   : > { %v2005_v54 = vpop.f32.mrf.mxu2  ;;  %v2007_v50 = vpop.f32.mrf.mxu3 }
 0x118   : > { %2853 = vst [vmem:[#allocation81_spill] sm:$0xff] %v2005_v54 }
 0x119   : > { %2854 = vst [vmem:[#allocation82_spill] sm:$0xff] %v2007_v50 }
 0x11b   : > { %v2009_v46 = vpop.f32.mrf.mxu0  ;;  %v2011_v42 = vpop.f32.mrf.mxu1 }
 0x11f   : > { %v2013_v38 = vpop.f32.mrf.mxu2  ;;  %v2015_v34 = vpop.f32.mrf.mxu3 }
 0x120   : > { %2855 = vst [vmem:[#allocation83_spill] sm:$0xff] %v2013_v38 }
 0x121   : > { %2856 = vst [vmem:[#allocation84_spill] sm:$0xff] %v2015_v34 }
 0x123   : > { %v2017_v30 = vpop.f32.mrf.mxu0  ;;  %v2019_v26 = vpop.f32.mrf.mxu1 }
 0x124   : > { %2857 = vst [vmem:[#allocation85_spill] sm:$0xff] %v2017_v30 }
 0x125   : > { %2858 = vst [vmem:[#allocation86_spill] sm:$0xff] %v2019_v26  ;;  %510 = sbr.rel (%p1310_p4) target bundleno = 539 (0x21b), region = 40 }
 0x127   : > { %v2021_v22 = vpop.f32.mrf.mxu2  ;;  %v2023_v18 = vpop.f32.mrf.mxu3 }
 0x128   : > { %2859 = vst [vmem:[#allocation87_spill] sm:$0xff] %v2021_v22 }
 0x129   : > { %2860 = vst [vmem:[#allocation88_spill] sm:$0xff] %v2023_v18 }
 0x12a   : > { %558 = vmatpush.msra.mxu2 %v2021_v22  ;;  %578 = vmatpush.msra.mxu3 %v2023_v18 }
 0x12b   : > { %518 = vmatpush.msra.mxu0 %v2017_v30  ;;  %538 = vmatpush.msra.mxu1 %v2019_v26 }
 0x12c   : > { %559 = vmatpush.msra.mxu2 %v2013_v38  ;;  %579 = vmatpush.msra.mxu3 %v2015_v34 }
 0x12d   : > { %519 = vmatpush.msra.mxu0 %v2009_v46  ;;  %539 = vmatpush.msra.mxu1 %v2011_v42 }
 0x12e   : > { %560 = vmatpush.msra.mxu2 %v2005_v54  ;;  %580 = vmatpush.msra.mxu3 %v2007_v50 }
 0x12f   : > { %520 = vmatpush.msra.mxu0 %v2001_v62  ;;  %540 = vmatpush.msra.mxu1 %v2003_v58 }
 0x130   : > { %561 = vmatpush.msra.mxu2 %v1997_v6  ;;  %581 = vmatpush.msra.mxu3 %v1999_v2 }
 0x131   : > { %521 = vmatpush.msra.mxu0 %v1993_v14  ;;  %541 = vmatpush.msra.mxu1 %v1995_v10 }
 0x132   : > { %562 = vmatpush.msra.mxu2 %v1989_v23  ;;  %582 = vmatpush.msra.mxu3 %v1991_v19 }
 0x133   : > { %522 = vmatpush.msra.mxu0 %v1985_v31  ;;  %542 = vmatpush.msra.mxu1 %v1987_v27 }
 0x134   : > { %563 = vmatpush.msra.mxu2 %v1981_v39  ;;  %583 = vmatpush.msra.mxu3 %v1983_v35 }
 0x135   : > { %523 = vmatpush.msra.mxu0 %v1977_v47  ;;  %543 = vmatpush.msra.mxu1 %v1979_v43 }
 0x136   : > { %564 = vmatpush.msra.mxu2 %v1973_v55  ;;  %584 = vmatpush.msra.mxu3 %v1975_v51 }
 0x137   : > { %524 = vmatpush.msra.mxu0 %v1969_v63  ;;  %544 = vmatpush.msra.mxu1 %v1971_v59 }
 0x138   : > { %565 = vmatpush.msra.mxu2 %v1965_v7  ;;  %585 = vmatpush.msra.mxu3 %v1967_v3 }
 0x139   : > { %525 = vmatpush.msra.mxu0 %v1961_v15  ;;  %545 = vmatpush.msra.mxu1 %v1963_v11 }
 0x13a   : > { %566 = vmatpush.msra.mxu2 %v1957_v20  ;;  %586 = vmatpush.msra.mxu3 %v1959_v16 }
 0x13b   : > { %526 = vmatpush.msra.mxu0 %v1953_v28  ;;  %546 = vmatpush.msra.mxu1 %v1955_v24 }
 0x13c   : > { %567 = vmatpush.msra.mxu2 %v1949_v36  ;;  %587 = vmatpush.msra.mxu3 %v1951_v32 }
 0x13d   : > { %527 = vmatpush.msra.mxu0 %v1945_v44  ;;  %547 = vmatpush.msra.mxu1 %v1947_v40 }
 0x13e   : > { %568 = vmatpush.msra.mxu2 %v1941_v52  ;;  %588 = vmatpush.msra.mxu3 %v1943_v48 }
 0x13f   : > { %528 = vmatpush.msra.mxu0 %v1937_v60  ;;  %548 = vmatpush.msra.mxu1 %v1939_v56 }
 0x140   : > { %569 = vmatpush.msra.mxu2 %v1933_v4  ;;  %589 = vmatpush.msra.mxu3 %v1935_v0 }
 0x141   : > { %529 = vmatpush.msra.mxu0 %v1929_v12  ;;  %549 = vmatpush.msra.mxu1 %v1931_v8  ;;  %v648_v12 = vmul.f32 %v2021_v22, %v2021_v22  ;;  %v664_v8 = vmul.f32 %v2023_v18, %v2023_v18  ;;  %v632_v18 = vmul.f32 %v2019_v26, %v2019_v26 }
 0x142   : > { %570 = vmatpush.msra.mxu2 %v1925_v21  ;;  %590 = vmatpush.msra.mxu3 %v1927_v17  ;;  %v663_v22 = vmul.f32 %v2015_v34, %v2015_v34  ;;  %v662_v26 = vmul.f32 %v2007_v50, %v2007_v50  ;;  %v630_v34 = vmul.f32 %v2003_v58, %v2003_v58 }
 0x143   : > { %530 = vmatpush.msra.mxu0 %v1921_v29  ;;  %550 = vmatpush.msra.mxu1 %v1923_v25 }
 0x144   : > { %571 = vmatpush.msra.mxu2 %v1917_v37  ;;  %591 = vmatpush.msra.mxu3 %v1919_v33  ;;  %v647_v33 = vmul.f32 %v2013_v38, %v2013_v38  ;;  %v615_v38 = vmul.f32 %v2009_v46, %v2009_v46 }
 0x145   : > { %531 = vmatpush.msra.mxu0 %v1913_v13  ;;  %551 = vmatpush.msra.mxu1 %v1915_v41  ;;  %v616_v41 = vmul.f32 %v2017_v30, %v2017_v30  ;;  %v631_v30 = vmul.f32 %v2011_v42, %v2011_v42 }
 0x146   : > { %572 = vmatpush.msra.mxu2 %v1909_v49  ;;  %592 = vmatpush.msra.mxu3 %v1911_v45 }
 0x147   : > { %532 = vmatpush.msra.mxu0 %v1905_v57  ;;  %552 = vmatpush.msra.mxu1 %v1907_v53  ;;  %v646_v53 = vmul.f32 %v2005_v54, %v2005_v54  ;;  %v661_v54 = vmul.f32 %v1999_v2, %v1999_v2  ;;  %v652_v2 = vmul.f32 %v1927_v17, %v1927_v17 }
 0x148   : > { %573 = vmatpush.msra.mxu2 %v1901_v1  ;;  %593 = vmatpush.msra.mxu3 %v1903_v61 }
 0x149   : > { %533 = vmatpush.msra.mxu0 %v1897_v9  ;;  %553 = vmatpush.msra.mxu1 %v1899_v5 }
 0x14a   : > { %705 = vmatpush.msrb.mxu2 %v648_v12  ;;  %725 = vmatpush.msrb.mxu3 %v664_v8  ;;  %v645_v8 = vmul.f32 %v1997_v6, %v1997_v6  ;;  %v614_v12 = vmul.f32 %v2001_v62, %v2001_v62 }
 0x14b   : > { %665 = vmatpush.msrb.mxu0 %v616_v41  ;;  %685 = vmatpush.msrb.mxu1 %v632_v18  ;;  %v613_v41 = vmul.f32 %v1993_v14, %v1993_v14  ;;  %v629_v18 = vmul.f32 %v1995_v10, %v1995_v10 }
 0x14c   : > { %706 = vmatpush.msrb.mxu2 %v647_v33  ;;  %726 = vmatpush.msrb.mxu3 %v663_v22  ;;  %v644_v33 = vmul.f32 %v1989_v23, %v1989_v23  ;;  %v660_v22 = vmul.f32 %v1991_v19, %v1991_v19 }
 0x14d   : > { %666 = vmatpush.msrb.mxu0 %v615_v38  ;;  %686 = vmatpush.msrb.mxu1 %v631_v30  ;;  %v612_v38 = vmul.f32 %v1985_v31, %v1985_v31  ;;  %v628_v30 = vmul.f32 %v1987_v27, %v1987_v27 }
 0x14e   : > { %707 = vmatpush.msrb.mxu2 %v646_v53  ;;  %727 = vmatpush.msrb.mxu3 %v662_v26  ;;  %v643_v53 = vmul.f32 %v1981_v39, %v1981_v39  ;;  %v659_v26 = vmul.f32 %v1983_v35, %v1983_v35 }
 0x14f   : > { %667 = vmatpush.msrb.mxu0 %v614_v12  ;;  %687 = vmatpush.msrb.mxu1 %v630_v34  ;;  %v611_v12 = vmul.f32 %v1977_v47, %v1977_v47  ;;  %v627_v34 = vmul.f32 %v1979_v43, %v1979_v43 }
 0x150   : > { %708 = vmatpush.msrb.mxu2 %v645_v8  ;;  %728 = vmatpush.msrb.mxu3 %v661_v54  ;;  %v642_v8 = vmul.f32 %v1973_v55, %v1973_v55  ;;  %v658_v54 = vmul.f32 %v1975_v51, %v1975_v51 }
 0x151   : > { %668 = vmatpush.msrb.mxu0 %v613_v41  ;;  %688 = vmatpush.msrb.mxu1 %v629_v18  ;;  %v610_v41 = vmul.f32 %v1969_v63, %v1969_v63  ;;  %v626_v18 = vmul.f32 %v1971_v59, %v1971_v59 }
 0x152   : > { %709 = vmatpush.msrb.mxu2 %v644_v33  ;;  %729 = vmatpush.msrb.mxu3 %v660_v22  ;;  %v641_v33 = vmul.f32 %v1965_v7, %v1965_v7  ;;  %v657_v22 = vmul.f32 %v1967_v3, %v1967_v3 }
 0x153   : > { %669 = vmatpush.msrb.mxu0 %v612_v38  ;;  %689 = vmatpush.msrb.mxu1 %v628_v30  ;;  %v609_v38 = vmul.f32 %v1961_v15, %v1961_v15  ;;  %v625_v30 = vmul.f32 %v1963_v11, %v1963_v11 }
 0x154   : > { %710 = vmatpush.msrb.mxu2 %v643_v53  ;;  %730 = vmatpush.msrb.mxu3 %v659_v26  ;;  %v640_v53 = vmul.f32 %v1957_v20, %v1957_v20  ;;  %v656_v26 = vmul.f32 %v1959_v16, %v1959_v16 }
 0x155   : > { %670 = vmatpush.msrb.mxu0 %v611_v12  ;;  %690 = vmatpush.msrb.mxu1 %v627_v34  ;;  %v608_v12 = vmul.f32 %v1953_v28, %v1953_v28  ;;  %v624_v34 = vmul.f32 %v1955_v24, %v1955_v24 }
 0x156   : > { %711 = vmatpush.msrb.mxu2 %v642_v8  ;;  %731 = vmatpush.msrb.mxu3 %v658_v54  ;;  %v639_v8 = vmul.f32 %v1949_v36, %v1949_v36  ;;  %v655_v54 = vmul.f32 %v1951_v32, %v1951_v32 }
 0x157   : > { %671 = vmatpush.msrb.mxu0 %v610_v41  ;;  %691 = vmatpush.msrb.mxu1 %v626_v18  ;;  %v607_v41 = vmul.f32 %v1945_v44, %v1945_v44  ;;  %v623_v18 = vmul.f32 %v1947_v40, %v1947_v40 }
 0x158   : > { %712 = vmatpush.msrb.mxu2 %v641_v33  ;;  %732 = vmatpush.msrb.mxu3 %v657_v22  ;;  %v638_v33 = vmul.f32 %v1941_v52, %v1941_v52  ;;  %v654_v22 = vmul.f32 %v1943_v48, %v1943_v48 }
 0x159   : > { %672 = vmatpush.msrb.mxu0 %v609_v38  ;;  %692 = vmatpush.msrb.mxu1 %v625_v30  ;;  %v606_v38 = vmul.f32 %v1937_v60, %v1937_v60  ;;  %v622_v30 = vmul.f32 %v1939_v56, %v1939_v56 }
 0x15a   : > { %713 = vmatpush.msrb.mxu2 %v640_v53  ;;  %733 = vmatpush.msrb.mxu3 %v656_v26  ;;  %v637_v53 = vmul.f32 %v1933_v4, %v1933_v4  ;;  %v636_v26 = vmul.f32 %v1925_v21, %v1925_v21 }
 0x15b   : > { %673 = vmatpush.msrb.mxu0 %v608_v12  ;;  %693 = vmatpush.msrb.mxu1 %v624_v34  ;;  %v2861_v12 = vld [vmem:[#allocation71_spill] sm:$0xff]  ;;  %v2862_v34 = vld [vmem:[#allocation72_spill] sm:$0xff] }
 0x15c   : > { %714 = vmatpush.msrb.mxu2 %v639_v8  ;;  %734 = vmatpush.msrb.mxu3 %v655_v54  ;;  %v653_v8 = vmul.f32 %v1935_v0, %v1935_v0  ;;  %v605_v50 = vmul.f32 %v2861_v12, %v2861_v12  ;;  %v621_v54 = vmul.f32 %v2862_v34, %v2862_v34 }
 0x15d   : > { %674 = vmatpush.msrb.mxu0 %v607_v41  ;;  %694 = vmatpush.msrb.mxu1 %v623_v18  ;;  %v1418_v41 = vmov 1.0   ;;  %v604_v18 = vmul.f32 %v1921_v29, %v1921_v29  ;;  %v650_v34 = vmul.f32 %v1911_v45, %v1911_v45 }
 0x15e   : > { %715 = vmatpush.msrb.mxu2 %v638_v33  ;;  %735 = vmatpush.msrb.mxu3 %v654_v22  ;;  %v635_v33 = vmul.f32 %v1917_v37, %v1917_v37  ;;  %v620_v22 = vmul.f32 %v1923_v25, %v1923_v25 }
 0x15f   : > { %675 = vmatpush.msrb.mxu0 %v606_v38  ;;  %574 = vmatmul.f32.vlgmr.msra.gmra.mxu2 %v1418_v41  ;;  %v2863_v38 = vld [vmem:[#allocation70_spill] sm:$0xff] }
 0x160   : > { %716 = vmatpush.msrb.mxu2 %v637_v53  ;;  %695 = vmatpush.msrb.mxu1 %v622_v30  ;;  %v634_v53 = vmul.f32 %v1909_v49, %v1909_v49  ;;  %v651_v30 = vmul.f32 %v2863_v38, %v2863_v38  ;;  %v649_v38 = vmul.f32 %v1903_v61, %v1903_v61 }
 0x161   : > { %736 = vmatpush.msrb.mxu3 %v653_v8  ;;  %676 = vmatpush.msrb.mxu0 %v605_v50  ;;  %v2864_v8 = vld [vmem:[#allocation69_spill] sm:$0xff]  ;;  %v633_v50 = vmul.f32 %v1901_v1, %v1901_v1 }
 0x162   : > { %717 = vmatpush.msrb.mxu2 %v636_v26  ;;  %594 = vmatmul.f32.vlgmr.msra.gmra.mxu3 %v1418_v41  ;;  %v603_v26 = vmul.f32 %v1913_v13, %v1913_v13  ;;  %v619_v12 = vmul.f32 %v2864_v8, %v2864_v8 }
 0x163   : > { %696 = vmatpush.msrb.mxu1 %v621_v54  ;;  %737 = vmatpush.msrb.mxu3 %v652_v2  ;;  %v602_v54 = vmul.f32 %v1905_v57, %v1905_v57 }
 0x164   : > { %718 = vmatpush.msrb.mxu2 %v635_v33  ;;  %534 = vmatmul.f32.vlgmr.msra.gmra.mxu0 %v1418_v41  ;;  %v2865_v33 = vld [vmem:[#allocation68_spill] sm:$0xff] }
 0x165   : > { %554 = vmatmul.f32.vlgmr.msra.gmra.mxu1 %v1418_v41  ;;  %677 = vmatpush.msrb.mxu0 %v604_v18  ;;  %v618_v2 = vmul.f32 %v2865_v33, %v2865_v33  ;;  %v601_v18 = vmul.f32 %v1897_v9, %v1897_v9 }
 0x166   : > { %697 = vmatpush.msrb.mxu1 %v620_v22  ;;  %719 = vmatpush.msrb.mxu2 %v634_v53  ;;  %v617_v22 = vmul.f32 %v1899_v5, %v1899_v5  ;;  %v1419_v53 = vmov 0.0  }
 0x167   : > { %738 = vmatpush.msrb.mxu3 %v651_v30  ;;  %678 = vmatpush.msrb.mxu0 %v603_v26  ;;  %515 = vst [vmem:[#allocation2] sm:$0x1] %v1419_v53 }
 0x168   : > { %698 = vmatpush.msrb.mxu1 %v619_v12  ;;  %720 = vmatpush.msrb.mxu2 %v633_v50  ;;  %516 = vst [vmem:[#allocation3] sm:$0x1] %v1419_v53 }
 0x169   : > { %739 = vmatpush.msrb.mxu3 %v650_v34  ;;  %721 = vmatmul.f32.vlgmr.msrb.gmra.mxu2 %v1418_v41 }
 0x16a   : > { %679 = vmatpush.msrb.mxu0 %v602_v54  ;;  %699 = vmatpush.msrb.mxu1 %v618_v2 }
 0x16b   : > { %740 = vmatpush.msrb.mxu3 %v649_v38 }
 0x16c   : > { %741 = vmatmul.f32.vlgmr.msrb.gmra.mxu3 %v1418_v41  ;;  %680 = vmatpush.msrb.mxu0 %v601_v18 }
 0x16d   : > { %700 = vmatpush.msrb.mxu1 %v617_v22  ;;  %681 = vmatmul.f32.vlgmr.msrb.gmra.mxu0 %v1418_v41 }
 0x16e   : > { %701 = vmatmul.f32.vlgmr.msrb.gmra.mxu1 %v1418_v41  ;;  %v517_v33 = vld [vmem:[#allocation2] sm:$0x1] }
 0x16f   : > { %v600_v51 = vld [vmem:[#allocation3] sm:$0x1] }
 0x1e1   : > { %v535_v30 = vpop.f32.mrf.mxu0 }
 0x1e2   : > { %v555_v26 = vpop.f32.mrf.mxu1  ;;  %v575_v12 = vpop.f32.mrf.mxu2 }
 0x1e3   : > { %v556_v8 = vadd.f32 %v555_v26, %v535_v30 }
 0x1e5   : > { %v576_v50 = vadd.f32 %v575_v12, %v556_v8  ;;  %v595_v34 = vpop.f32.mrf.mxu3 }
 0x1e7   : > { %v596_v19 = vadd.f32 %v595_v34, %v576_v50 }
 0x1e9   : > { %v598_v35 = vadd.f32 %v596_v19, %v517_v33 }
 0x1ea   : > { %v682_v54 = vpop.f32.mrf.mxu0 }
 0x1eb   : > { %599 = vst [vmem:[#allocation2] sm:$0x1] %v598_v35  ;;  %v702_v2 = vpop.f32.mrf.mxu1 }
 0x1ec   : > { %v703_v38 = vadd.f32 %v702_v2, %v682_v54  ;;  %v722_v18 = vpop.f32.mrf.mxu2  ;;  %v756_v54 = vld [vmem:[%s2688_s2] sm:$0x1] }
 0x1ed   : > { %v769_v2 = vld [vmem:[%s2689_s3] sm:$0x1] }
 0x1ee   : > { %v723_v22 = vadd.f32 %v722_v18, %v703_v38 }
 0x1ef   : > { %v742_v41 = vpop.f32.mrf.mxu3 }
 0x1f0   : > { %v743_v3 = vadd.f32 %v742_v41, %v723_v22 }
 0x1f2   : > { %v745_v16 = vadd.f32 %v743_v3, %v600_v51  ;;  %v750_v53 = vld [vmem:[#allocation2] sm:$0x1] }
 0x1f3   : > { %v751_v32 = vmul.f32 0.001953125, %v750_v53 }
 0x1f4   : > { %746 = vst [vmem:[#allocation3] sm:$0x1] %v745_v16 }
 0x1f5   : > { %v754_v8 = vmul.f32 %v751_v32, %v751_v32 }
 0x1fb   : > { %v752_v30 = vld [vmem:[#allocation3] sm:$0x1] }
 0x1fc   : > { %v753_v26 = vmul.f32 0.001953125, %v752_v30 }
 0x1fe   : > { %v755_v12 = vsub.f32 %v753_v26, %v754_v8 }
 0x200   : > { %v757_v48 = vadd.f32 1e-05, %v755_v12 }
 0x202   : > { %1390 = vrsqrt.f32 %v757_v48  ;;  %vm764_vm1 = vweird.f32 %v757_v48 }
 0x208   : > { %v1391_v19 = vpop.eup %1390 }
 0x209   : > { %v759_v50 = vmul.f32 %v1391_v19, %v757_v48  ;;  %vm765_vm0 = vweird.f32 %v1391_v19 }
 0x20a   : > { %vm766_vm2 = vmor %vm764_vm1, %vm765_vm0 }
 0x20b   : > { %v760_v35 = vmul.f32 %v1391_v19, %v759_v50 }
 0x20d   : > { %v761_v34 = vmul.f32 0.5, %v760_v35 }
 0x20f   : > { %v762_v33 = vsub.f32 1.5, %v761_v34 }
 0x211   : > { %v763_v51 = vmul.f32 %v1391_v19, %v762_v33 }
 0x213   : > { %v767_v16 = vsel %vm766_vm2, %v1391_v19, %v763_v51 }
 0x214   : > { %v768_v3 = vmul.f32 %v767_v16, %v756_v54 }
 0x216   : > { %v770_v38 = vmul.f32 %v768_v3, %v751_v32  ;;  %773 = vst [vmem:[#allocation2] sm:$0x1] %v768_v3 }
 0x218   : > { %v771_v18 = vsub.f32 %v769_v2, %v770_v38 }
 0x21a   : > { %772 = vst [vmem:[#allocation3] sm:$0x1] %v771_v18 }
 0x21b PF: > { %p1311_p5 = scmp.ne.s32.totalorder %s1408_s15, 1 }
 0x21d   : > { %777 = sbr.rel (%p1311_p5) target bundleno = 649 (0x289), region = 52 }
 0x222   : > { %v2225_v22 = vld [vmem:[#allocation2] ss:$0 sm:$0xff]  ;;  %v2227_v41 = vld [vmem:[#allocation3] ss:$0 sm:$0xff]  ;;  %v2867_v38 = vld [vmem:[#allocation6_spill] sm:$0xff] }
 0x223   : > { %v782_v48 = vmul.f32 %v2225_v22, %v1897_v9  ;;  %v783_v53 = vmul.f32 %v2225_v22, %v1905_v57  ;;  %v784_v32 = vmul.f32 %v2225_v22, %v1913_v13  ;;  %v785_v30 = vmul.f32 %v2225_v22, %v1921_v29  ;;  %v2866_v26 = vld [vmem:[#allocation71_spill] sm:$0xff] }
 0x224   : > { %v786_v8 = vmul.f32 %v2225_v22, %v2866_v26  ;;  %v787_v12 = vmul.f32 %v2225_v22, %v1937_v60  ;;  %v788_v19 = vmul.f32 %v2225_v22, %v1945_v44  ;;  %v789_v9 = vmul.f32 %v2225_v22, %v1953_v28  ;;  %v2869_v26 = vld [vmem:[#allocation14_spill] sm:$0xff] }
 0x225   : > { %v850_v57 = vadd.f32 %v2227_v41, %v782_v48  ;;  %v851_v50 = vadd.f32 %v2227_v41, %v783_v53  ;;  %v852_v13 = vadd.f32 %v2227_v41, %v784_v32  ;;  %v853_v29 = vadd.f32 %v2227_v41, %v785_v30  ;;  %v2868_v48 = vld [vmem:[#allocation10_spill] sm:$0xff] }
 0x226   : > { %v854_v35 = vadd.f32 %v2227_v41, %v786_v8  ;;  %v855_v34 = vadd.f32 %v2227_v41, %v787_v12  ;;  %v856_v60 = vadd.f32 %v2227_v41, %v788_v19  ;;  %v857_v33 = vadd.f32 %v2227_v41, %v789_v9  ;;  %v2870_v12 = vld [vmem:[#allocation18_spill] sm:$0xff] }
 0x227   : > { %vm914_vm3 = vcmp.ge.f32.partialorder %v850_v57, 0.0  ;;  %v978_v44 = vmul.f32 0.2, %v850_v57  ;;  %vm915_vm4 = vcmp.ge.f32.partialorder %v851_v50, 0.0  ;;  %v979_v28 = vmul.f32 0.2, %v851_v50 }
 0x228   : > { %vm916_vm5 = vcmp.ge.f32.partialorder %v852_v13, 0.0  ;;  %v980_v54 = vmul.f32 0.2, %v852_v13  ;;  %vm917_vm6 = vcmp.ge.f32.partialorder %v853_v29, 0.0  ;;  %v981_v51 = vmul.f32 0.2, %v853_v29 }
 0x229   : > { %v1042_v16 = vsel %vm914_vm3, %v850_v57, %v978_v44  ;;  %v1043_v3 = vsel %vm915_vm4, %v851_v50, %v979_v28  ;;  %vm918_vm7 = vcmp.ge.f32.partialorder %v854_v35, 0.0  ;;  %v982_v2 = vmul.f32 0.2, %v854_v35  ;;  %v2871_v57 = vld [vmem:[#allocation22_spill] sm:$0xff] }
 0x22a   : > { %v1106_v18 = vadd.f32 %v1042_v16, %v2867_v38  ;;  %v1107_v53 = vadd.f32 %v1043_v3, %v2868_v48  ;;  %v1044_v32 = vsel %vm916_vm5, %v852_v13, %v980_v54  ;;  %v1045_v30 = vsel %vm917_vm6, %v853_v29, %v981_v51  ;;  %v2873_v38 = vld [vmem:[#allocation30_spill] sm:$0xff] }
 0x22b   : > { %v1108_v8 = vadd.f32 %v1044_v32, %v2869_v26  ;;  %v1109_v19 = vadd.f32 %v1045_v30, %v2870_v12  ;;  %v1046_v9 = vsel %vm918_vm7, %v854_v35, %v982_v2  ;;  %vm919_vm8 = vcmp.ge.f32.partialorder %v855_v34, 0.0 }
 0x22c   : > { %1170 = vst [vmem:[%s2690_s4] sm:$0xff] %v1106_v18  ;;  %v1110_v50 = vadd.f32 %v1046_v9, %v2871_v57  ;;  %v983_v44 = vmul.f32 0.2, %v855_v34  ;;  %vm920_vm9 = vcmp.ge.f32.partialorder %v856_v60, 0.0  ;;  %v984_v28 = vmul.f32 0.2, %v856_v60  ;;  %v2875_v9 = vld [vmem:[#allocation38_spill] sm:$0xff] }
 0x22d   : > { %1171 = vst [vmem:[%s2690_s4 + $0x8] sm:$0xff] %v1107_v53  ;;  %vm921_vm10 = vcmp.ge.f32.partialorder %v857_v33, 0.0  ;;  %v985_v13 = vmul.f32 0.2, %v857_v33  ;;  %v790_v29 = vmul.f32 %v2225_v22, %v1961_v15  ;;  %v791_v35 = vmul.f32 %v2225_v22, %v1969_v63  ;;  %v2872_v15 = vld [vmem:[#allocation26_spill] sm:$0xff] }
 0x22e   : > { %1172 = vst [vmem:[%s2690_s4 + $0x10] sm:$0xff] %v1108_v8  ;;  %v1047_v54 = vsel %vm919_vm8, %v855_v34, %v983_v44  ;;  %v1048_v51 = vsel %vm920_vm9, %v856_v60, %v984_v28  ;;  %v792_v16 = vmul.f32 %v2225_v22, %v1977_v47  ;;  %v793_v3 = vmul.f32 %v2225_v22, %v1985_v31  ;;  %v2874_v34 = vld [vmem:[#allocation34_spill] sm:$0xff] }
 0x22f   : > { %1173 = vst [vmem:[%s2690_s4 + $0x18] sm:$0xff] %v1109_v19  ;;  %v1111_v2 = vadd.f32 %v1047_v54, %v2872_v15  ;;  %v1112_v63 = vadd.f32 %v1048_v51, %v2873_v38  ;;  %v1049_v18 = vsel %vm921_vm10, %v857_v33, %v985_v13  ;;  %v858_v48 = vadd.f32 %v2227_v41, %v790_v29  ;;  %v2876_v28 = vld [vmem:[#allocation42_spill] sm:$0xff]  ;;  %v2879_v38 = vld [vmem:[#allocation85_spill] sm:$0xff] }
 0x230   : > { %1174 = vst [vmem:[%s2690_s4 + $0x20] sm:$0xff] %v1110_v50  ;;  %v1113_v47 = vadd.f32 %v1049_v18, %v2874_v34  ;;  %v859_v60 = vadd.f32 %v2227_v41, %v791_v35  ;;  %v860_v31 = vadd.f32 %v2227_v41, %v792_v16  ;;  %v861_v53 = vadd.f32 %v2227_v41, %v793_v3  ;;  %v2877_v54 = vld [vmem:[#allocation46_spill] sm:$0xff]  ;;  %v2880_v34 = vld [vmem:[#allocation68_spill] sm:$0xff] }
 0x231   : > { %1175 = vst [vmem:[%s2690_s4 + $0x28] sm:$0xff] %v1111_v2  ;;  %vm922_vm11 = vcmp.ge.f32.partialorder %v858_v48, 0.0  ;;  %v986_v33 = vmul.f32 0.2, %v858_v48  ;;  %v794_v32 = vmul.f32 %v2225_v22, %v1993_v14  ;;  %v795_v30 = vmul.f32 %v2225_v22, %v2001_v62  ;;  %v2878_v16 = vld [vmem:[#allocation50_spill] sm:$0xff] }
 0x232   : > { %1176 = vst [vmem:[%s2690_s4 + $0x30] sm:$0xff] %v1112_v63  ;;  %vm923_vm12 = vcmp.ge.f32.partialorder %v859_v60, 0.0  ;;  %v987_v26 = vmul.f32 0.2, %v859_v60  ;;  %vm924_vm13 = vcmp.ge.f32.partialorder %v860_v31, 0.0  ;;  %vm925_vm14 = vcmp.ge.f32.partialorder %v861_v53, 0.0 }
 0x233   : > { %1177 = vst [vmem:[%s2690_s4 + $0x38] sm:$0xff] %v1113_v47  ;;  %v1050_v8 = vsel %vm922_vm11, %v858_v48, %v986_v33  ;;  %v988_v12 = vmul.f32 0.2, %v860_v31  ;;  %v989_v19 = vmul.f32 0.2, %v861_v53  ;;  %v862_v14 = vadd.f32 %v2227_v41, %v794_v32  ;;  %v2882_v33 = vld [vmem:[#allocation54_spill] sm:$0xff] }
 0x234   : > { %v1114_v57 = vadd.f32 %v1050_v8, %v2875_v9  ;;  %v1051_v62 = vsel %vm923_vm12, %v859_v60, %v987_v26  ;;  %v863_v50 = vadd.f32 %v2227_v41, %v795_v30  ;;  %v796_v44 = vmul.f32 %v2225_v22, %v2009_v46  ;;  %v2881_v60 = vld [vmem:[#allocation69_spill] sm:$0xff]  ;;  %v2883_v26 = vld [vmem:[#allocation58_spill] sm:$0xff] }
 0x235   : > { %v1115_v13 = vadd.f32 %v1051_v62, %v2876_v28  ;;  %v1052_v29 = vsel %vm924_vm13, %v860_v31, %v988_v12  ;;  %v1053_v35 = vsel %vm925_vm14, %v861_v53, %v989_v19  ;;  %vm926_vm15 = vcmp.ge.f32.partialorder %v862_v14, 0.0  ;;  %v2884_v62 = vld [vmem:[#allocation72_spill] sm:$0xff] }
 0x236   : > { %1178 = vst [vmem:[%s2690_s4 + $0x40] sm:$0xff] %v1114_v57  ;;  %v1116_v51 = vadd.f32 %v1052_v29, %v2877_v54  ;;  %v1117_v3 = vadd.f32 %v1053_v35, %v2878_v16  ;;  %v990_v15 = vmul.f32 0.2, %v862_v14  ;;  %vm927_vm0 = vcmp.ge.f32.partialorder %v863_v50, 0.0 }
 0x237   : > { %1179 = vst [vmem:[%s2690_s4 + $0x48] sm:$0xff] %v1115_v13  ;;  %v991_v46 = vmul.f32 0.2, %v863_v50  ;;  %v864_v2 = vadd.f32 %v2227_v41, %v796_v44  ;;  %v797_v63 = vmul.f32 %v2225_v22, %v2879_v38  ;;  %v798_v18 = vmul.f32 %v2225_v22, %v1899_v5  ;;  %v2885_v44 = vld [vmem:[#allocation62_spill] sm:$0xff] }
 0x238   : > { %1180 = vst [vmem:[%s2690_s4 + $0x50] sm:$0xff] %v1116_v51  ;;  %v1054_v48 = vsel %vm926_vm15, %v862_v14, %v990_v15  ;;  %v799_v47 = vmul.f32 %v2225_v22, %v2880_v34  ;;  %v800_v31 = vmul.f32 %v2225_v22, %v2881_v60  ;;  %v801_v53 = vmul.f32 %v2225_v22, %v1923_v25 }
 0x239   : > { %1181 = vst [vmem:[%s2690_s4 + $0x58] sm:$0xff] %v1117_v3  ;;  %v1118_v5 = vadd.f32 %v1054_v48, %v2882_v33  ;;  %v1055_v32 = vsel %vm927_vm0, %v863_v50, %v991_v46  ;;  %vm928_vm1 = vcmp.ge.f32.partialorder %v864_v2, 0.0  ;;  %v992_v30 = vmul.f32 0.2, %v864_v2  ;;  %v2886_v3 = vld [vmem:[#allocation66_spill] sm:$0xff]  ;;  %v2888_v48 = vld [vmem:[#allocation11_spill] sm:$0xff] }
 0x23a   : > { %v1119_v8 = vadd.f32 %v1055_v32, %v2883_v26  ;;  %v865_v12 = vadd.f32 %v2227_v41, %v797_v63  ;;  %v866_v19 = vadd.f32 %v2227_v41, %v798_v18  ;;  %v867_v14 = vadd.f32 %v2227_v41, %v799_v47  ;;  %v2887_v63 = vld [vmem:[#allocation7_spill] sm:$0xff] }
 0x23b   : > { %1182 = vst [vmem:[%s2690_s4 + $0x60] sm:$0xff] %v1118_v5  ;;  %v1056_v25 = vsel %vm928_vm1, %v864_v2, %v992_v30  ;;  %v868_v9 = vadd.f32 %v2227_v41, %v800_v31  ;;  %v869_v57 = vadd.f32 %v2227_v41, %v801_v53  ;;  %v802_v50 = vmul.f32 %v2225_v22, %v2884_v62  ;;  %v2889_v31 = vld [vmem:[#allocation15_spill] sm:$0xff] }
 0x23c   : > { %1183 = vst [vmem:[%s2690_s4 + $0x68] sm:$0xff] %v1119_v8  ;;  %v1120_v28 = vadd.f32 %v1056_v25, %v2885_v44  ;;  %vm929_vm2 = vcmp.ge.f32.partialorder %v865_v12, 0.0  ;;  %v993_v13 = vmul.f32 0.2, %v865_v12  ;;  %vm930_vm3 = vcmp.ge.f32.partialorder %v866_v19, 0.0  ;;  %v2890_v33 = vld [vmem:[#allocation19_spill] sm:$0xff] }
 0x23d   : > { %v994_v29 = vmul.f32 0.2, %v866_v19  ;;  %vm931_vm4 = vcmp.ge.f32.partialorder %v867_v14, 0.0  ;;  %v995_v35 = vmul.f32 0.2, %v867_v14  ;;  %vm932_vm5 = vcmp.ge.f32.partialorder %v868_v9, 0.0 }
 0x23e   : > { %1184 = vst [vmem:[%s2690_s4 + $0x70] sm:$0xff] %v1120_v28  ;;  %v1057_v54 = vsel %vm929_vm2, %v865_v12, %v993_v13  ;;  %v996_v51 = vmul.f32 0.2, %v868_v9  ;;  %vm933_vm6 = vcmp.ge.f32.partialorder %v869_v57, 0.0  ;;  %v997_v16 = vmul.f32 0.2, %v869_v57 }
 0x23f   : > { %v1121_v15 = vadd.f32 %v1057_v54, %v2886_v3  ;;  %v1058_v46 = vsel %vm930_vm3, %v866_v19, %v994_v29  ;;  %v1059_v2 = vsel %vm931_vm4, %v867_v14, %v995_v35  ;;  %v870_v38 = vadd.f32 %v2227_v41, %v802_v50  ;;  %v2892_v54 = vld [vmem:[#allocation27_spill] sm:$0xff] }
 0x240   : > { %v1122_v18 = vadd.f32 %v1058_v46, %v2887_v63  ;;  %v1123_v34 = vadd.f32 %v1059_v2, %v2888_v48  ;;  %v1060_v47 = vsel %vm932_vm5, %v868_v9, %v996_v51  ;;  %v1061_v60 = vsel %vm933_vm6, %v869_v57, %v997_v16  ;;  %v2893_v46 = vld [vmem:[#allocation31_spill] sm:$0xff] }
 0x241   : > { %1185 = vst [vmem:[%s2690_s4 + $0x78] sm:$0xff] %v1121_v15  ;;  %v1124_v53 = vadd.f32 %v1060_v47, %v2889_v31  ;;  %v1125_v5 = vadd.f32 %v1061_v60, %v2890_v33  ;;  %vm934_vm7 = vcmp.ge.f32.partialorder %v870_v38, 0.0  ;;  %v998_v32 = vmul.f32 0.2, %v870_v38  ;;  %v2896_v60 = vld [vmem:[#allocation43_spill] sm:$0xff] }
 0x242   : > { %1186 = vst [vmem:[%s2690_s4 + $0x80] sm:$0xff] %v1122_v18  ;;  %v803_v30 = vmul.f32 %v2225_v22, %v1939_v56  ;;  %v804_v26 = vmul.f32 %v2225_v22, %v1947_v40  ;;  %v805_v8 = vmul.f32 %v2225_v22, %v1955_v24  ;;  %v806_v12 = vmul.f32 %v2225_v22, %v1963_v11  ;;  %v2891_v24 = vld [vmem:[#allocation23_spill] sm:$0xff] }
 0x243   : > { %1187 = vst [vmem:[%s2690_s4 + $0x88] sm:$0xff] %v1123_v34  ;;  %v1062_v19 = vsel %vm934_vm7, %v870_v38, %v998_v32  ;;  %v807_v14 = vmul.f32 %v2225_v22, %v1971_v59  ;;  %v808_v56 = vmul.f32 %v2225_v22, %v1979_v43  ;;  %v809_v40 = vmul.f32 %v2225_v22, %v1987_v27  ;;  %v2894_v38 = vld [vmem:[#allocation35_spill] sm:$0xff] }
 0x244   : > { %1188 = vst [vmem:[%s2690_s4 + $0x90] sm:$0xff] %v1124_v53  ;;  %v1126_v11 = vadd.f32 %v1062_v19, %v2891_v24  ;;  %v871_v25 = vadd.f32 %v2227_v41, %v803_v30  ;;  %v872_v9 = vadd.f32 %v2227_v41, %v804_v26  ;;  %v873_v57 = vadd.f32 %v2227_v41, %v805_v8  ;;  %v2895_v34 = vld [vmem:[#allocation39_spill] sm:$0xff] }
 0x245   : > { %1189 = vst [vmem:[%s2690_s4 + $0x98] sm:$0xff] %v1125_v5  ;;  %v874_v43 = vadd.f32 %v2227_v41, %v806_v12  ;;  %v875_v27 = vadd.f32 %v2227_v41, %v807_v14  ;;  %v876_v59 = vadd.f32 %v2227_v41, %v808_v56  ;;  %v877_v62 = vadd.f32 %v2227_v41, %v809_v40  ;;  %v2897_v33 = vld [vmem:[#allocation47_spill] sm:$0xff]  ;;  %v2898_v12 = vld [vmem:[#allocation86_spill] sm:$0xff] }
 0x246   : > { %1190 = vst [vmem:[%s2690_s4 + $0xa0] sm:$0xff] %v1126_v11  ;;  %vm935_vm8 = vcmp.ge.f32.partialorder %v871_v25, 0.0  ;;  %v999_v50 = vmul.f32 0.2, %v871_v25  ;;  %vm936_vm9 = vcmp.ge.f32.partialorder %v872_v9, 0.0  ;;  %vm937_vm10 = vcmp.ge.f32.partialorder %v873_v57, 0.0 }
 0x247   : > { %v1000_v44 = vmul.f32 0.2, %v872_v9  ;;  %v1001_v28 = vmul.f32 0.2, %v873_v57  ;;  %vm938_vm11 = vcmp.ge.f32.partialorder %v874_v43, 0.0  ;;  %vm939_vm12 = vcmp.ge.f32.partialorder %v875_v27, 0.0 }
 0x248   : > { %v1063_v13 = vsel %vm935_vm8, %v871_v25, %v999_v50  ;;  %v1002_v29 = vmul.f32 0.2, %v874_v43  ;;  %v1003_v35 = vmul.f32 0.2, %v875_v27  ;;  %vm940_vm13 = vcmp.ge.f32.partialorder %v876_v59, 0.0  ;;  %v2900_v50 = vld [vmem:[#allocation55_spill] sm:$0xff] }
 0x249   : > { %v1127_v51 = vadd.f32 %v1063_v13, %v2892_v54  ;;  %v1064_v16 = vsel %vm936_vm9, %v872_v9, %v1000_v44  ;;  %v1065_v3 = vsel %vm937_vm10, %v873_v57, %v1001_v28  ;;  %v1004_v15 = vmul.f32 0.2, %v876_v59 }
 0x24a   : > { %v1128_v2 = vadd.f32 %v1064_v16, %v2893_v46  ;;  %v1129_v63 = vadd.f32 %v1065_v3, %v2894_v38  ;;  %v1066_v18 = vsel %vm938_vm11, %v874_v43, %v1002_v29  ;;  %v1067_v48 = vsel %vm939_vm12, %v875_v27, %v1003_v35  ;;  %v2901_v35 = vld [vmem:[#allocation59_spill] sm:$0xff] }
 0x24b   : > { %1191 = vst [vmem:[%s2690_s4 + $0xa8] sm:$0xff] %v1127_v51  ;;  %v1130_v47 = vadd.f32 %v1066_v18, %v2895_v34  ;;  %v1131_v31 = vadd.f32 %v1067_v48, %v2896_v60  ;;  %v1068_v53 = vsel %vm940_vm13, %v876_v59, %v1004_v15  ;;  %vm941_vm14 = vcmp.ge.f32.partialorder %v877_v62, 0.0  ;;  %v2902_v51 = vld [vmem:[#allocation63_spill] sm:$0xff] }
 0x24c   : > { %1192 = vst [vmem:[%s2690_s4 + $0xb0] sm:$0xff] %v1128_v2  ;;  %v1132_v5 = vadd.f32 %v1068_v53, %v2897_v33  ;;  %v1005_v32 = vmul.f32 0.2, %v877_v62  ;;  %v810_v30 = vmul.f32 %v2225_v22, %v1995_v10  ;;  %v811_v26 = vmul.f32 %v2225_v22, %v2003_v58  ;;  %v2903_v15 = vld [vmem:[#allocation67_spill] sm:$0xff] }
 0x24d   : > { %1193 = vst [vmem:[%s2690_s4 + $0xb8] sm:$0xff] %v1129_v63  ;;  %v812_v8 = vmul.f32 %v2225_v22, %v2011_v42  ;;  %v813_v19 = vmul.f32 %v2225_v22, %v2898_v12  ;;  %v814_v14 = vmul.f32 %v2225_v22, %v1901_v1  ;;  %v815_v56 = vmul.f32 %v2225_v22, %v1909_v49  ;;  %v2899_v1 = vld [vmem:[#allocation51_spill] sm:$0xff]  ;;  %v2904_v63 = vld [vmem:[#allocation4_spill] sm:$0xff] }
 0x24e   : > { %1194 = vst [vmem:[%s2690_s4 + $0xc0] sm:$0xff] %v1130_v47  ;;  %v1069_v58 = vsel %vm941_vm14, %v877_v62, %v1005_v32  ;;  %v878_v10 = vadd.f32 %v2227_v41, %v810_v30  ;;  %v879_v40 = vadd.f32 %v2227_v41, %v811_v26  ;;  %v816_v42 = vmul.f32 %v2225_v22, %v1917_v37 }
 0x24f   : > { %1195 = vst [vmem:[%s2690_s4 + $0xc8] sm:$0xff] %v1131_v31  ;;  %v1133_v24 = vadd.f32 %v1069_v58, %v2899_v1  ;;  %v880_v49 = vadd.f32 %v2227_v41, %v812_v8  ;;  %v881_v11 = vadd.f32 %v2227_v41, %v813_v19  ;;  %v882_v25 = vadd.f32 %v2227_v41, %v814_v14 }
 0x250   : > { %1196 = vst [vmem:[%s2690_s4 + $0xd0] sm:$0xff] %v1132_v5  ;;  %vm942_vm15 = vcmp.ge.f32.partialorder %v878_v10, 0.0  ;;  %v1006_v9 = vmul.f32 0.2, %v878_v10  ;;  %vm943_vm0 = vcmp.ge.f32.partialorder %v879_v40, 0.0  ;;  %v883_v37 = vadd.f32 %v2227_v41, %v815_v56 }
 0x251   : > { %1197 = vst [vmem:[%s2690_s4 + $0xd8] sm:$0xff] %v1133_v24  ;;  %v1007_v57 = vmul.f32 0.2, %v879_v40  ;;  %vm944_vm1 = vcmp.ge.f32.partialorder %v880_v49, 0.0  ;;  %v1008_v43 = vmul.f32 0.2, %v880_v49  ;;  %v884_v27 = vadd.f32 %v2227_v41, %v816_v42 }
 0x252   : > { %v1070_v59 = vsel %vm942_vm15, %v878_v10, %v1006_v9  ;;  %vm945_vm2 = vcmp.ge.f32.partialorder %v881_v11, 0.0  ;;  %v1009_v62 = vmul.f32 0.2, %v881_v11  ;;  %vm946_vm3 = vcmp.ge.f32.partialorder %v882_v25, 0.0  ;;  %v2907_v42 = vld [vmem:[#allocation16_spill] sm:$0xff] }
 0x253   : > { %v1134_v44 = vadd.f32 %v1070_v59, %v2900_v50  ;;  %v1071_v28 = vsel %vm943_vm0, %v879_v40, %v1007_v57  ;;  %v1072_v13 = vsel %vm944_vm1, %v880_v49, %v1008_v43  ;;  %v1010_v29 = vmul.f32 0.2, %v882_v25  ;;  %v2909_v9 = vld [vmem:[#allocation24_spill] sm:$0xff] }
 0x254   : > { %v1135_v54 = vadd.f32 %v1071_v28, %v2901_v35  ;;  %v1136_v16 = vadd.f32 %v1072_v13, %v2902_v51  ;;  %v1073_v3 = vsel %vm945_vm2, %v881_v11, %v1009_v62  ;;  %vm947_vm4 = vcmp.ge.f32.partialorder %v883_v37, 0.0 }
 0x255   : > { %1198 = vst [vmem:[%s2690_s4 + $0xe0] sm:$0xff] %v1134_v44  ;;  %v1137_v46 = vadd.f32 %v1073_v3, %v2903_v15  ;;  %v1074_v2 = vsel %vm946_vm3, %v882_v25, %v1010_v29  ;;  %v1011_v38 = vmul.f32 0.2, %v883_v37  ;;  %vm948_vm5 = vcmp.ge.f32.partialorder %v884_v27, 0.0  ;;  %v2911_v44 = vld [vmem:[#allocation32_spill] sm:$0xff]  ;;  %v2912_v3 = vld [vmem:[#allocation81_spill] sm:$0xff] }
 0x256   : > { %1199 = vst [vmem:[%s2690_s4 + $0xe8] sm:$0xff] %v1135_v54  ;;  %v1138_v18 = vadd.f32 %v1074_v2, %v2904_v63  ;;  %v1012_v48 = vmul.f32 0.2, %v884_v27  ;;  %v817_v34 = vmul.f32 %v2225_v22, %v1925_v21  ;;  %v818_v47 = vmul.f32 %v2225_v22, %v1933_v4  ;;  %v2905_v21 = vld [vmem:[#allocation8_spill] sm:$0xff]  ;;  %v2913_v15 = vld [vmem:[#allocation83_spill] sm:$0xff] }
 0x257   : > { %1200 = vst [vmem:[%s2690_s4 + $0xf0] sm:$0xff] %v1136_v16  ;;  %v1075_v60 = vsel %vm947_vm4, %v883_v37, %v1011_v38  ;;  %v819_v31 = vmul.f32 %v2225_v22, %v1941_v52  ;;  %v820_v53 = vmul.f32 %v2225_v22, %v1949_v36  ;;  %v821_v33 = vmul.f32 %v2225_v22, %v1957_v20  ;;  %v2906_v52 = vld [vmem:[#allocation12_spill] sm:$0xff] }
 0x258   : > { %1201 = vst [vmem:[%s2690_s4 + $0xf8] sm:$0xff] %v1137_v46  ;;  %v1139_v4 = vadd.f32 %v1075_v60, %v2905_v21  ;;  %v1076_v5 = vsel %vm948_vm5, %v884_v27, %v1012_v48  ;;  %v885_v32 = vadd.f32 %v2227_v41, %v817_v34  ;;  %v886_v30 = vadd.f32 %v2227_v41, %v818_v47  ;;  %v2914_v2 = vld [vmem:[#allocation36_spill] sm:$0xff] }
 0x259   : > { %1202 = vst [vmem:[%s2690_s4 + $0x100] sm:$0xff] %v1138_v18  ;;  %v1140_v36 = vadd.f32 %v1076_v5, %v2906_v52  ;;  %v887_v26 = vadd.f32 %v2227_v41, %v819_v31  ;;  %v888_v20 = vadd.f32 %v2227_v41, %v820_v53  ;;  %v889_v8 = vadd.f32 %v2227_v41, %v821_v33  ;;  %v2915_v18 = vld [vmem:[#allocation40_spill] sm:$0xff]  ;;  %v2916_v33 = vld [vmem:[#allocation87_spill] sm:$0xff] }
 0x25a   : > { %1203 = vst [vmem:[%s2690_s4 + $0x108] sm:$0xff] %v1139_v4  ;;  %vm949_vm6 = vcmp.ge.f32.partialorder %v885_v32, 0.0  ;;  %v1013_v12 = vmul.f32 0.2, %v885_v32  ;;  %vm950_vm7 = vcmp.ge.f32.partialorder %v886_v30, 0.0  ;;  %v822_v19 = vmul.f32 %v2225_v22, %v1965_v7  ;;  %v2908_v7 = vld [vmem:[#allocation20_spill] sm:$0xff] }
 0x25b   : > { %1204 = vst [vmem:[%s2690_s4 + $0x110] sm:$0xff] %v1140_v36  ;;  %v1014_v14 = vmul.f32 0.2, %v886_v30  ;;  %vm951_vm8 = vcmp.ge.f32.partialorder %v887_v26, 0.0  ;;  %v1015_v56 = vmul.f32 0.2, %v887_v26  ;;  %v823_v58 = vmul.f32 %v2225_v22, %v1973_v55 }
 0x25c   : > { %v1077_v10 = vsel %vm949_vm6, %v885_v32, %v1013_v12  ;;  %vm952_vm9 = vcmp.ge.f32.partialorder %v888_v20, 0.0  ;;  %v1016_v40 = vmul.f32 0.2, %v888_v20  ;;  %vm953_vm10 = vcmp.ge.f32.partialorder %v889_v8, 0.0  ;;  %v2910_v55 = vld [vmem:[#allocation28_spill] sm:$0xff] }
 0x25d   : > { %v1141_v1 = vadd.f32 %v1077_v10, %v2907_v42  ;;  %v1078_v24 = vsel %vm950_vm7, %v886_v30, %v1014_v14  ;;  %v1079_v49 = vsel %vm951_vm8, %v887_v26, %v1015_v56  ;;  %v1017_v11 = vmul.f32 0.2, %v889_v8  ;;  %v2917_v4 = vld [vmem:[#allocation44_spill] sm:$0xff] }
 0x25e   : > { %v1142_v25 = vadd.f32 %v1078_v24, %v2908_v7  ;;  %v1143_v37 = vadd.f32 %v1079_v49, %v2909_v9  ;;  %v1080_v57 = vsel %vm952_vm9, %v888_v20, %v1016_v40  ;;  %v890_v43 = vadd.f32 %v2227_v41, %v822_v19  ;;  %v2918_v52 = vld [vmem:[#allocation48_spill] sm:$0xff]  ;;  %v2920_v40 = vld [vmem:[#allocation70_spill] sm:$0xff] }
 0x25f   : > { %1205 = vst [vmem:[%s2690_s4 + $0x118] sm:$0xff] %v1141_v1  ;;  %v1144_v27 = vadd.f32 %v1080_v57, %v2910_v55  ;;  %v1081_v59 = vsel %vm953_vm10, %v889_v8, %v1017_v11  ;;  %v891_v62 = vadd.f32 %v2227_v41, %v823_v58  ;;  %v824_v50 = vmul.f32 %v2225_v22, %v1981_v39  ;;  %v2919_v14 = vld [vmem:[#allocation52_spill] sm:$0xff]  ;;  %v2923_v55 = vld [vmem:[#allocation73_spill] sm:$0xff] }
 0x260   : > { %1206 = vst [vmem:[%s2690_s4 + $0x120] sm:$0xff] %v1142_v25  ;;  %v1145_v28 = vadd.f32 %v1081_v59, %v2911_v44  ;;  %vm954_vm11 = vcmp.ge.f32.partialorder %v890_v43, 0.0  ;;  %v1018_v13 = vmul.f32 0.2, %v890_v43  ;;  %v825_v29 = vmul.f32 %v2225_v22, %v1989_v23  ;;  %v2921_v1 = vld [vmem:[#allocation56_spill] sm:$0xff] }
 0x261   : > { %1207 = vst [vmem:[%s2690_s4 + $0x128] sm:$0xff] %v1143_v37  ;;  %vm955_vm12 = vcmp.ge.f32.partialorder %v891_v62, 0.0  ;;  %v1019_v35 = vmul.f32 0.2, %v891_v62  ;;  %v892_v54 = vadd.f32 %v2227_v41, %v824_v50  ;;  %v826_v39 = vmul.f32 %v2225_v22, %v1997_v6  ;;  %v2924_v59 = vld [vmem:[#allocation64_spill] sm:$0xff] }
 0x262   : > { %1208 = vst [vmem:[%s2690_s4 + $0x130] sm:$0xff] %v1144_v27  ;;  %v1082_v51 = vsel %vm954_vm11, %v890_v43, %v1018_v13  ;;  %v893_v16 = vadd.f32 %v2227_v41, %v825_v29  ;;  %v827_v23 = vmul.f32 %v2225_v22, %v2912_v3  ;;  %v828_v46 = vmul.f32 %v2225_v22, %v2913_v15 }
 0x263   : > { %1209 = vst [vmem:[%s2690_s4 + $0x138] sm:$0xff] %v1145_v28  ;;  %v1146_v38 = vadd.f32 %v1082_v51, %v2914_v2  ;;  %v1083_v6 = vsel %vm955_vm12, %v891_v62, %v1019_v35  ;;  %vm956_vm13 = vcmp.ge.f32.partialorder %v892_v54, 0.0  ;;  %v1020_v63 = vmul.f32 0.2, %v892_v54  ;;  %v2925_v35 = vld [vmem:[#allocation74_spill] sm:$0xff] }
 0x264   : > { %v1147_v48 = vadd.f32 %v1083_v6, %v2915_v18  ;;  %vm957_vm14 = vcmp.ge.f32.partialorder %v893_v16, 0.0  ;;  %v1021_v34 = vmul.f32 0.2, %v893_v16  ;;  %v894_v47 = vadd.f32 %v2227_v41, %v826_v39  ;;  %v2926_v39 = vld [vmem:[#allocation5_spill] sm:$0xff] }
 0x265   : > { %1210 = vst [vmem:[%s2690_s4 + $0x140] sm:$0xff] %v1146_v38  ;;  %v1084_v60 = vsel %vm956_vm13, %v892_v54, %v1020_v63  ;;  %v895_v31 = vadd.f32 %v2227_v41, %v827_v23  ;;  %v896_v53 = vadd.f32 %v2227_v41, %v828_v46  ;;  %v829_v21 = vmul.f32 %v2225_v22, %v2916_v33  ;;  %v2927_v23 = vld [vmem:[#allocation9_spill] sm:$0xff] }
 0x266   : > { %1211 = vst [vmem:[%s2690_s4 + $0x148] sm:$0xff] %v1147_v48  ;;  %v1148_v5 = vadd.f32 %v1084_v60, %v2917_v4  ;;  %v1085_v32 = vsel %vm957_vm14, %v893_v16, %v1021_v34  ;;  %vm958_vm15 = vcmp.ge.f32.partialorder %v894_v47, 0.0  ;;  %v1022_v30 = vmul.f32 0.2, %v894_v47  ;;  %v2928_v46 = vld [vmem:[#allocation13_spill] sm:$0xff]  ;;  %v2929_v34 = vld [vmem:[#allocation75_spill] sm:$0xff] }
 0x267   : > { %v1149_v36 = vadd.f32 %v1085_v32, %v2918_v52  ;;  %vm959_vm0 = vcmp.ge.f32.partialorder %v895_v31, 0.0  ;;  %v1023_v26 = vmul.f32 0.2, %v895_v31  ;;  %vm960_vm1 = vcmp.ge.f32.partialorder %v896_v53, 0.0  ;;  %v2930_v60 = vld [vmem:[#allocation76_spill] sm:$0xff] }
 0x268   : > { %1212 = vst [vmem:[%s2690_s4 + $0x150] sm:$0xff] %v1148_v5  ;;  %v1086_v20 = vsel %vm958_vm15, %v894_v47, %v1022_v30  ;;  %v1024_v8 = vmul.f32 0.2, %v896_v53  ;;  %v897_v12 = vadd.f32 %v2227_v41, %v829_v21  ;;  %v830_v19 = vmul.f32 %v2225_v22, %v1903_v61  ;;  %v2922_v61 = vld [vmem:[#allocation60_spill] sm:$0xff]  ;;  %v2932_v21 = vld [vmem:[#allocation17_spill] sm:$0xff] }
 0x269   : > { %1213 = vst [vmem:[%s2690_s4 + $0x158] sm:$0xff] %v1149_v36  ;;  %v1150_v56 = vadd.f32 %v1086_v20, %v2919_v14  ;;  %v1087_v58 = vsel %vm959_vm0, %v895_v31, %v1023_v26  ;;  %v831_v10 = vmul.f32 %v2225_v22, %v1911_v45  ;;  %v832_v42 = vmul.f32 %v2225_v22, %v2920_v40  ;;  %v2933_v30 = vld [vmem:[#allocation21_spill] sm:$0xff]  ;;  %v2935_v14 = vld [vmem:[#allocation78_spill] sm:$0xff] }
 0x26a   : > { %v1151_v24 = vadd.f32 %v1087_v58, %v2921_v1  ;;  %v1088_v49 = vsel %vm960_vm1, %v896_v53, %v1024_v8  ;;  %vm961_vm2 = vcmp.ge.f32.partialorder %v897_v12, 0.0  ;;  %v1025_v11 = vmul.f32 0.2, %v897_v12  ;;  %v2931_v53 = vld [vmem:[#allocation77_spill] sm:$0xff]  ;;  %v2936_v58 = vld [vmem:[#allocation79_spill] sm:$0xff]  ;;  %v2937_v1 = vld [vmem:[#allocation80_spill] sm:$0xff] }
 0x26b   : > { %1214 = vst [vmem:[%s2690_s4 + $0x160] sm:$0xff] %v1150_v56  ;;  %v1152_v7 = vadd.f32 %v1088_v49, %v2922_v61  ;;  %v898_v25 = vadd.f32 %v2227_v41, %v830_v19  ;;  %v899_v9 = vadd.f32 %v2227_v41, %v831_v10  ;;  %v900_v45 = vadd.f32 %v2227_v41, %v832_v42  ;;  %v2934_v36 = vld [vmem:[#allocation25_spill] sm:$0xff] }
 0x26c   : > { %1215 = vst [vmem:[%s2690_s4 + $0x168] sm:$0xff] %v1151_v24  ;;  %v1089_v37 = vsel %vm961_vm2, %v897_v12, %v1025_v11  ;;  %v833_v57 = vmul.f32 %v2225_v22, %v1927_v17  ;;  %v834_v43 = vmul.f32 %v2225_v22, %v1935_v0  ;;  %v835_v27 = vmul.f32 %v2225_v22, %v2923_v55  ;;  %v2938_v49 = vld [vmem:[#allocation29_spill] sm:$0xff] }
 0x26d   : > { %1216 = vst [vmem:[%s2690_s4 + $0x170] sm:$0xff] %v1152_v7  ;;  %v1153_v62 = vadd.f32 %v1089_v37, %v2924_v59  ;;  %vm962_vm3 = vcmp.ge.f32.partialorder %v898_v25, 0.0  ;;  %v1026_v50 = vmul.f32 0.2, %v898_v25  ;;  %vm963_vm4 = vcmp.ge.f32.partialorder %v899_v9, 0.0  ;;  %v2939_v37 = vld [vmem:[#allocation33_spill] sm:$0xff] }
 0x26e   : > { %v1027_v44 = vmul.f32 0.2, %v899_v9  ;;  %vm964_vm5 = vcmp.ge.f32.partialorder %v900_v45, 0.0  ;;  %v1028_v28 = vmul.f32 0.2, %v900_v45  ;;  %v901_v17 = vadd.f32 %v2227_v41, %v833_v57 }
 0x26f   : > { %1217 = vst [vmem:[%s2690_s4 + $0x178] sm:$0xff] %v1153_v62  ;;  %v1090_v0 = vsel %vm962_vm3, %v898_v25, %v1026_v50  ;;  %v902_v13 = vadd.f32 %v2227_v41, %v834_v43  ;;  %v903_v29 = vadd.f32 %v2227_v41, %v835_v27  ;;  %v836_v54 = vmul.f32 %v2225_v22, %v2925_v35  ;;  %v2940_v27 = vld [vmem:[#allocation82_spill] sm:$0xff]  ;;  %v2941_v62 = vld [vmem:[#allocation37_spill] sm:$0xff] }
 0x270   : > { %v1154_v51 = vadd.f32 %v1090_v0, %v2926_v39  ;;  %v1091_v16 = vsel %vm963_vm4, %v899_v9, %v1027_v44  ;;  %v1092_v3 = vsel %vm964_vm5, %v900_v45, %v1028_v28  ;;  %vm965_vm6 = vcmp.ge.f32.partialorder %v901_v17, 0.0  ;;  %v2943_v39 = vld [vmem:[#allocation84_spill] sm:$0xff] }
 0x271   : > { %v1155_v15 = vadd.f32 %v1091_v16, %v2927_v23  ;;  %v1156_v2 = vadd.f32 %v1092_v3, %v2928_v46  ;;  %v1029_v38 = vmul.f32 0.2, %v901_v17  ;;  %vm966_vm7 = vcmp.ge.f32.partialorder %v902_v13, 0.0  ;;  %v2944_v16 = vld [vmem:[#allocation45_spill] sm:$0xff] }
 0x272   : > { %1218 = vst [vmem:[%s2690_s4 + $0x180] sm:$0xff] %v1154_v51  ;;  %v1030_v6 = vmul.f32 0.2, %v902_v13  ;;  %vm967_vm8 = vcmp.ge.f32.partialorder %v903_v29, 0.0  ;;  %v1031_v63 = vmul.f32 0.2, %v903_v29  ;;  %v904_v18 = vadd.f32 %v2227_v41, %v836_v54 }
 0x273   : > { %1219 = vst [vmem:[%s2690_s4 + $0x188] sm:$0xff] %v1155_v15  ;;  %v1093_v48 = vsel %vm965_vm6, %v901_v17, %v1029_v38  ;;  %v837_v47 = vmul.f32 %v2225_v22, %v2929_v34  ;;  %v838_v31 = vmul.f32 %v2225_v22, %v2930_v60  ;;  %v839_v33 = vmul.f32 %v2225_v22, %v2931_v53  ;;  %v2942_v17 = vld [vmem:[#allocation41_spill] sm:$0xff]  ;;  %v2945_v15 = vld [vmem:[#allocation88_spill] sm:$0xff] }
 0x274   : > { %1220 = vst [vmem:[%s2690_s4 + $0x190] sm:$0xff] %v1156_v2  ;;  %v1157_v4 = vadd.f32 %v1093_v48, %v2932_v21  ;;  %v1094_v5 = vsel %vm966_vm7, %v902_v13, %v1030_v6  ;;  %v1095_v32 = vsel %vm967_vm8, %v903_v29, %v1031_v63  ;;  %vm968_vm9 = vcmp.ge.f32.partialorder %v904_v18, 0.0  ;;  %v2946_v2 = vld [vmem:[#allocation49_spill] sm:$0xff] }
 0x275   : > { %v1158_v52 = vadd.f32 %v1094_v5, %v2933_v30  ;;  %v1159_v26 = vadd.f32 %v1095_v32, %v2934_v36  ;;  %v1032_v20 = vmul.f32 0.2, %v904_v18  ;;  %v905_v8 = vadd.f32 %v2227_v41, %v837_v47  ;;  %v2948_v60 = vld [vmem:[#allocation57_spill] sm:$0xff] }
 0x276   : > { %1221 = vst [vmem:[%s2690_s4 + $0x198] sm:$0xff] %v1157_v4  ;;  %v906_v12 = vadd.f32 %v2227_v41, %v838_v31  ;;  %v907_v19 = vadd.f32 %v2227_v41, %v839_v33  ;;  %v840_v56 = vmul.f32 %v2225_v22, %v2935_v14  ;;  %v841_v10 = vmul.f32 %v2225_v22, %v2936_v58  ;;  %v2949_v21 = vld [vmem:[#allocation61_spill] sm:$0xff] }
 0x277   : > { %1222 = vst [vmem:[%s2690_s4 + $0x1a0] sm:$0xff] %v1158_v52  ;;  %v1096_v40 = vsel %vm968_vm9, %v904_v18, %v1032_v20  ;;  %vm969_vm10 = vcmp.ge.f32.partialorder %v905_v8, 0.0  ;;  %v1033_v42 = vmul.f32 0.2, %v905_v8  ;;  %v842_v24 = vmul.f32 %v2225_v22, %v2937_v1  ;;  %v2947_v18 = vld [vmem:[#allocation53_spill] sm:$0xff] }
 0x278   : > { %1223 = vst [vmem:[%s2690_s4 + $0x1a8] sm:$0xff] %v1159_v26  ;;  %v1160_v11 = vadd.f32 %v1096_v40, %v2938_v49  ;;  %vm970_vm11 = vcmp.ge.f32.partialorder %v906_v12, 0.0  ;;  %v1034_v61 = vmul.f32 0.2, %v906_v12  ;;  %vm971_vm12 = vcmp.ge.f32.partialorder %v907_v19, 0.0  ;;  %v2950_v32 = vld [vmem:[#allocation65_spill] sm:$0xff] }
 0x279   : > { %v1097_v7 = vsel %vm969_vm10, %v905_v8, %v1033_v42  ;;  %v1035_v25 = vmul.f32 0.2, %v907_v19  ;;  %v908_v9 = vadd.f32 %v2227_v41, %v840_v56  ;;  %v909_v45 = vadd.f32 %v2227_v41, %v841_v10 }
 0x27a   : > { %1224 = vst [vmem:[%s2690_s4 + $0x1b0] sm:$0xff] %v1160_v11  ;;  %v1161_v57 = vadd.f32 %v1097_v7, %v2939_v37  ;;  %v1098_v43 = vsel %vm970_vm11, %v906_v12, %v1034_v61  ;;  %v910_v55 = vadd.f32 %v2227_v41, %v842_v24  ;;  %v843_v59 = vmul.f32 %v2225_v22, %v2940_v27 }
 0x27b   : > { %v1162_v50 = vadd.f32 %v1098_v43, %v2941_v62  ;;  %v1099_v44 = vsel %vm971_vm12, %v907_v19, %v1035_v25  ;;  %vm972_vm13 = vcmp.ge.f32.partialorder %v908_v9, 0.0  ;;  %v1036_v28 = vmul.f32 0.2, %v908_v9 }
 0x27c   : > { %1225 = vst [vmem:[%s2690_s4 + $0x1b8] sm:$0xff] %v1161_v57  ;;  %v1163_v0 = vadd.f32 %v1099_v44, %v2942_v17  ;;  %vm973_vm14 = vcmp.ge.f32.partialorder %v909_v45, 0.0  ;;  %v1037_v13 = vmul.f32 0.2, %v909_v45  ;;  %vm974_vm15 = vcmp.ge.f32.partialorder %v910_v55, 0.0 }
 0x27d   : > { %1226 = vst [vmem:[%s2690_s4 + $0x1c0] sm:$0xff] %v1162_v50  ;;  %v1100_v29 = vsel %vm972_vm13, %v908_v9, %v1036_v28  ;;  %v1038_v35 = vmul.f32 0.2, %v910_v55  ;;  %v911_v54 = vadd.f32 %v2227_v41, %v843_v59  ;;  %v844_v51 = vmul.f32 %v2225_v22, %v2943_v39 }
 0x27e   : > { %1227 = vst [vmem:[%s2690_s4 + $0x1c8] sm:$0xff] %v1163_v0  ;;  %v1164_v3 = vadd.f32 %v1100_v29, %v2944_v16  ;;  %v1101_v23 = vsel %vm973_vm14, %v909_v45, %v1037_v13  ;;  %v845_v46 = vmul.f32 %v2225_v22, %v2945_v15 }
 0x27f   : > { %v1165_v38 = vadd.f32 %v1101_v23, %v2946_v2  ;;  %v1102_v6 = vsel %vm974_vm15, %v910_v55, %v1038_v35  ;;  %vm975_vm0 = vcmp.ge.f32.partialorder %v911_v54, 0.0  ;;  %v1039_v63 = vmul.f32 0.2, %v911_v54 }
 0x280   : > { %1228 = vst [vmem:[%s2690_s4 + $0x1d0] sm:$0xff] %v1164_v3  ;;  %v1166_v48 = vadd.f32 %v1102_v6, %v2947_v18  ;;  %v912_v34 = vadd.f32 %v2227_v41, %v844_v51  ;;  %v913_v47 = vadd.f32 %v2227_v41, %v845_v46 }
 0x281   : > { %1229 = vst [vmem:[%s2690_s4 + $0x1d8] sm:$0xff] %v1165_v38  ;;  %v1103_v22 = vsel %vm975_vm0, %v911_v54, %v1039_v63 }
 0x282   : > { %1230 = vst [vmem:[%s2690_s4 + $0x1e0] sm:$0xff] %v1166_v48  ;;  %v1167_v31 = vadd.f32 %v1103_v22, %v2948_v60  ;;  %vm976_vm1 = vcmp.ge.f32.partialorder %v912_v34, 0.0  ;;  %v1040_v53 = vmul.f32 0.2, %v912_v34  ;;  %vm977_vm2 = vcmp.ge.f32.partialorder %v913_v47, 0.0 }
 0x283   : > { %v1041_v33 = vmul.f32 0.2, %v913_v47 }
 0x284   : > { %1231 = vst [vmem:[%s2690_s4 + $0x1e8] sm:$0xff] %v1167_v31  ;;  %v1104_v41 = vsel %vm976_vm1, %v912_v34, %v1040_v53 }
 0x285   : > { %v1168_v4 = vadd.f32 %v1104_v41, %v2949_v21  ;;  %v1105_v5 = vsel %vm977_vm2, %v913_v47, %v1041_v33 }
 0x286   : > { %v1169_v30 = vadd.f32 %v1105_v5, %v2950_v32 }
 0x287   : > { %1232 = vst [vmem:[%s2690_s4 + $0x1f0] sm:$0xff] %v1168_v4 }
 0x288   : > { %1233 = vst [vmem:[%s2690_s4 + $0x1f8] sm:$0xff] %v1169_v30 }
 0x289 PF: > { %s14_s17 = sadd.s32 1, %s1416_s17   ;;  %s2951_s15 = smov %s1412_s16 }
 0x28a   : > { %p11_p6 = scmp.ge.s32.totalorder %s14_s17, 4   ;;  %s2952_s16 = smov %s2954_s18 }
 0x28c   :  { %13 = sbr.rel (!%p11_p6) target bundleno = 2 (0x2), region = 82 }

</bundles_post_ra>
